<compile_context>
chip_gen: v7x
topology: tpu7x:2x2x1
jax: 0.10.0
libtpu: 0.0.40
codegen_flags: <defaults>
</compile_context>

<pallas_src>
import functools

import jax
import jax.numpy as jnp
from jax import lax
from jax.experimental import pallas as pl
from jax.experimental.pallas import tpu as pltpu


# ----------------------------------------------------------------------------
# Fused kernel: expand(1x1) -> depthwise(3x3) -> project(1x1) [+res]
# ----------------------------------------------------------------------------
def _irb_fused_kernel(*args, H, W, lpad, stride, expand, use_res):
    it = iter(args)
    x_ref = next(it)                       # expand: (1, H*W, Cin); else (1, H, W, Cin)
    if expand:
        w_exp_ref = next(it)               # (Cin, C)   compute dtype, BN-scale folded
        b_exp_ref = next(it)               # (1, C)     f32
    w_dw_ref = next(it)                    # (9, C)     compute dtype, BN-scale folded
    b_dw_ref = next(it)                    # (1, C)     compute dtype
    w_pt_ref = next(it)                    # (oup, C)   compute dtype, w_proj^T, BN folded
    b_p_ref = next(it)                     # (oup, 1)   f32
    x_res_ref = next(it) if use_res else None   # (1, Cin, H*W) channel-major residual
    o_ref = next(it)                       # (1, oup, HR*W)
    hpad_ref = next(it)                    # VMEM scratch (H+2, lpad+W+2, C) compute dtype

    cd = hpad_ref.dtype
    Hp = H + 2
    WS = hpad_ref.shape[1]
    C = hpad_ref.shape[-1]
    HR = H if stride == 1 else H // 2      # output rows produced by this kernel
    Mo = HR * W

    # --- zero ONLY the 1-wide halo the 3x3 windows read (interior is fully
    # --- overwritten every step; per-step so it is megacore-safe) -----------
    hpad_ref[0] = jnp.zeros((WS, C), cd)                            # top pad row
    hpad_ref[H + 1] = jnp.zeros((WS, C), cd)                        # bottom pad row
    hpad_ref[:, pl.ds(lpad - 2, 2), :] = jnp.zeros((Hp, 2, C), cd)  # left pad cols
    hpad_ref[:, pl.ds(lpad + W, 2), :] = jnp.zeros((Hp, 2, C), cd)  # right pad cols

    # --- 1x1 expand + BN + ReLU6 on the MXU; hidden never leaves VMEM -------
    if expand:
        h = jnp.dot(x_ref[0].astype(cd), w_exp_ref[...],
                    preferred_element_type=jnp.float32)             # (M, C) f32
        h = jnp.clip(h + b_exp_ref[...], 0.0, 6.0)
        # Aligned interior store (sublane offset = lpad, a tile multiple).
        hpad_ref[pl.ds(1, H), pl.ds(lpad, W), :] = h.reshape(H, W, C).astype(cd)
    else:
        hpad_ref[pl.ds(1, H), pl.ds(lpad, W), :] = x_ref[0].astype(cd)

    # --- 3x3 depthwise + BN + ReLU6 on the VPU (compute dtype) --------------
    # Hoist the 3 shifted column windows; reuse each across the 3 row taps.
    acc = jnp.zeros((HR, W, C), cd)
    for kw in range(3):
        col = hpad_ref[:, pl.ds(lpad - 1 + kw, W), :]               # (Hp, W, C)
        for kh in range(3):
            win = col[kh:kh + H]                                    # (H, W, C)
            if stride == 2:
                # Keep only even output rows (leading-dim reshape + index:
                # layout-preserving, no relayout, no strided loads).
                win = win.reshape(HR, 2, W, C)[:, 0]                # (HR, W, C)
            acc = acc + win * w_dw_ref[kh * 3 + kw, :]
    dw = jnp.clip(acc + b_dw_ref[...], 0.0, 6.0)                    # (HR, W, C)

    # --- 1x1 projection + BN (+residual), channel-major => lane-dense store -
    out_t = lax.dot_general(
        w_pt_ref[...], dw.reshape(Mo, C),
        dimension_numbers=(((1,), (1,)), ((), ())),
        preferred_element_type=jnp.float32)                         # (oup, Mo)
    out_t = out_t + b_p_ref[...]
    if use_res:
        out_t = out_t + x_res_ref[0].astype(jnp.float32)
    o_ref[0] = out_t.astype(o_ref.dtype)


# ----------------------------------------------------------------------------
# VMEM limit: ~3/4 of physical per-TC VMEM (leaves headroom on v7x's 64 MiB)
# ----------------------------------------------------------------------------
@functools.lru_cache(maxsize=1)
def _pick_vmem_limit():
    try:
        cap = int(pltpu.get_tpu_info().vmem_capacity_bytes)
        return int(min(cap * 3 // 4, 96 * 1024 * 1024))
    except Exception:
        return 48 * 1024 * 1024


# ----------------------------------------------------------------------------
# Wrapper
# ----------------------------------------------------------------------------
def irb_forward(x_nchw, params, *, stride, expand_ratio,
                compute_dtype=jnp.bfloat16):
    assert stride in (1, 2)
    N, Cin, H, W = x_nchw.shape
    oup = params["w_proj"].shape[1]
    hidden = params["w_dw"].shape[1]
    use_res = (stride == 1) and (Cin == oup)
    expand = expand_ratio != 1
    if not expand:
        assert hidden == Cin
    if stride == 2:
        assert H % 2 == 0 and W % 2 == 0, "stride-2 fast path assumes even H, W"
        assert not use_res  # projection commutes with subsampling only w/o residual

    cd = jnp.dtype(compute_dtype)
    f32 = jnp.float32
    lpad = 8 if cd == jnp.dtype(jnp.float32) else 16   # sublane-tile aligned interior
    Hp, WS = H + 2, lpad + W + 2
    M = H * W
    HR = H if stride == 1 else H // 2
    Mo = HR * W

    x_nhwc = jnp.transpose(x_nchw, (0, 2, 3, 1))       # small input, one cheap XLA op

    args, in_specs = [], []
    if expand:
        args.append(x_nhwc.reshape(N, M, Cin))
        in_specs.append(pl.BlockSpec((1, M, Cin), lambda n: (n, 0, 0)))
        # Fold BN scale into the expand weight (trace-time, free) and pre-cast.
        w_exp = (params["w_exp"] * params["s_exp"][None, :]).astype(cd)
        args += [w_exp, params["b_exp"].reshape(1, hidden).astype(f32)]
        in_specs += [pl.BlockSpec((Cin, hidden), lambda n: (0, 0)),
                     pl.BlockSpec((1, hidden), lambda n: (0, 0))]
    else:
        args.append(x_nhwc)
        in_specs.append(pl.BlockSpec((1, H, W, Cin), lambda n: (n, 0, 0, 0)))

    w_dw = (params["w_dw"] * params["s_dw"][None, :]).astype(cd)
    w_pt = (params["w_proj"] * params["s_proj"][None, :]).T.astype(cd)   # (oup, hidden)
    args += [w_dw, params["b_dw"].reshape(1, hidden).astype(cd),
             w_pt, params["b_proj"].reshape(oup, 1).astype(f32)]
    in_specs += [pl.BlockSpec((9, hidden), lambda n: (0, 0)),
                 pl.BlockSpec((1, hidden), lambda n: (0, 0)),
                 pl.BlockSpec((oup, hidden), lambda n: (0, 0)),
                 pl.BlockSpec((oup, 1), lambda n: (0, 0))]
    if use_res:
        # Residual in channel-major layout is a free view of the NCHW input;
        # no f32 upcast copy in HBM (cast happens in-kernel).
        args.append(x_nchw.reshape(N, Cin, M))
        in_specs.append(pl.BlockSpec((1, Cin, M), lambda n: (n, 0, 0)))

    kernel = functools.partial(_irb_fused_kernel, H=H, W=W, lpad=lpad,
                               stride=stride, expand=expand, use_res=use_res)
    out = pl.pallas_call(
        kernel,
        out_shape=jax.ShapeDtypeStruct((N, oup, Mo), x_nchw.dtype),
        grid=(N,),
        in_specs=in_specs,
        out_specs=pl.BlockSpec((1, oup, Mo), lambda n: (n, 0, 0)),
        scratch_shapes=[pltpu.VMEM((Hp, WS, hidden), cd)],
        compiler_params=pltpu.CompilerParams(
            dimension_semantics=("parallel",),
            vmem_limit_bytes=_pick_vmem_limit()),
    )(*args)

    out = out.reshape(N, oup, HR, W)       # free reshape (row-major match)
    if stride == 2:
        # Rows were already subsampled in-kernel; only the (exact) column
        # subsample remains -- on a half-size tensor.
        out = out[:, :, :, ::2]
    return out


# ----------------------------------------------------------------------------
# Pure-JAX reference mirroring the kernel's compute-dtype casts
# ----------------------------------------------------------------------------
def irb_reference(x_nchw, params, *, stride, expand_ratio,
                  compute_dtype=jnp.float32):
    cd = jnp.dtype(compute_dtype)
    f32 = jnp.float32
    x = jnp.transpose(x_nchw, (0, 2, 3, 1)).astype(f32)
    N, H, W, Cin = x.shape
    oup = params["w_proj"].shape[1]
    use_res = (stride == 1) and (Cin == oup)

    if expand_ratio != 1:
        w_exp = (params["w_exp"] * params["s_exp"][None, :]).astype(cd)
        h = jnp.einsum("nhwc,cd->nhwd", x.astype(cd), w_exp,
                       preferred_element_type=f32)
        h = jnp.clip(h + params["b_exp"], 0.0, 6.0).astype(cd)
    else:
        h = x.astype(cd)
    hidden = h.shape[-1]

    w_dw = (params["w_dw"] * params["s_dw"][None, :]).astype(cd)
    b_dw = params["b_dw"].astype(cd)
    hp = jnp.pad(h, ((0, 0), (1, 1), (1, 1), (0, 0)))
    acc = jnp.zeros((N, H, W, hidden), cd)
    for kw in range(3):              # match the kernel's accumulation order
        for kh in range(3):
            acc = acc + hp[:, kh:kh + H, kw:kw + W, :] * w_dw[kh * 3 + kw]
    dw = jnp.clip(acc + b_dw, 0.0, 6.0)
    if stride == 2:
        dw = dw[:, ::2, ::2, :]

    w_p = (params["w_proj"] * params["s_proj"][None, :]).astype(cd)
    o = jnp.einsum("nhwc,cd->nhwd", dw, w_p, preferred_element_type=f32)
    o = o + params["b_proj"]
    if use_res:
        o = o + x
    return jnp.transpose(o, (0, 3, 1, 2)).astype(x_nchw.dtype)


# ----------------------------------------------------------------------------
# Deterministic parameter construction (inference-folded BatchNorm)
# ----------------------------------------------------------------------------
def fold_bn(gamma, beta, mean, var, eps=1e-5):
    scale = gamma * jax.lax.rsqrt(var + eps)
    bias = beta - mean * scale
    return scale, bias


def make_params(key, inp, oup, expand_ratio):
    hidden = int(round(inp * expand_ratio))
    keys = jax.random.split(key, 6)

    def bn(k, c):
        g = 1.0 + 0.1 * jax.random.normal(k, (c,), jnp.float32)
        b = 0.05 * jax.random.normal(jax.random.fold_in(k, 1), (c,), jnp.float32)
        m = 0.02 * jax.random.normal(jax.random.fold_in(k, 2), (c,), jnp.float32)
        v = 0.5 + jax.random.uniform(jax.random.fold_in(k, 3), (c,), jnp.float32)
        return fold_bn(g, b, m, v)

    params = {}
    params["w_exp"] = 0.2 * jax.random.normal(keys[0], (inp, hidden), jnp.float32)
    params["s_exp"], params["b_exp"] = bn(keys[1], hidden)
    params["w_dw"] = 0.2 * jax.random.normal(keys[2], (9, hidden), jnp.float32)
    params["s_dw"], params["b_dw"] = bn(keys[3], hidden)
    params["w_proj"] = 0.2 * jax.random.normal(keys[4], (hidden, oup), jnp.float32)
    params["s_proj"], params["b_proj"] = bn(keys[5], oup)
    return params


if __name__ == "__main__":
    key = jax.random.PRNGKey(0)

    configs = [
        # (N, inp, oup, H, W, stride, expand_ratio)
        (2, 8, 8, 16, 16, 1, 4),     # expansion + residual (primary case)
        (2, 8, 16, 16, 16, 2, 4),    # stride-2, no residual
        (2, 16, 16, 16, 16, 1, 1),   # expand_ratio == 1 branch, with residual
    ]
    for idx, (N, inp, oup, H, W, stride, er) in enumerate(configs):
        kx, kp = jax.random.split(jax.random.fold_in(key, idx))
        x = jax.random.normal(kx, (N, inp, H, W), jnp.float32)
        params = make_params(kp, inp, oup, er)

        # Exact f32 compute path (v5e-style VPU math).
        out32 = jax.block_until_ready(
            irb_forward(x, params, stride=stride, expand_ratio=er,
                        compute_dtype=jnp.float32))
        ref32 = irb_reference(x, params, stride=stride, expand_ratio=er,
                              compute_dtype=jnp.float32)
        assert out32.shape == ref32.shape, (idx, out32.shape, ref32.shape)
        err32 = float(jnp.max(jnp.abs(out32 - ref32)))
        assert jnp.allclose(out32, ref32, rtol=1e-3, atol=1e-3), (idx, "f32", err32)

        # bf16 hidden / MXU path (default; recommended for v6e/v7x).
        outbf = jax.block_until_ready(
            irb_forward(x, params, stride=stride, expand_ratio=er,
                        compute_dtype=jnp.bfloat16))
        refbf = irb_reference(x, params, stride=stride, expand_ratio=er,
                              compute_dtype=jnp.bfloat16)
        assert outbf.shape == refbf.shape, (idx, outbf.shape, refbf.shape)
        errbf = float(jnp.max(jnp.abs(outbf - refbf)))
        assert jnp.allclose(outbf, refbf, rtol=2e-2, atol=2e-2), (idx, "bf16", errbf)

    print("KERNEL_OK")
</pallas_src>

<mosaic_0001>
module attributes {stable_mosaic.version = 11 : i64} {
  func.func @_irb_fused_kernel(%arg0: i32, %arg1: memref<1x256x8xf32, #tpu.memory_space<vmem>>, %arg2: memref<8x32xf32, #tpu.memory_space<vmem>>, %arg3: memref<1x32xf32, #tpu.memory_space<vmem>>, %arg4: memref<9x32xf32, #tpu.memory_space<vmem>>, %arg5: memref<1x32xf32, #tpu.memory_space<vmem>>, %arg6: memref<8x32xf32, #tpu.memory_space<vmem>>, %arg7: memref<8x1xf32, #tpu.memory_space<vmem>>, %arg8: memref<1x8x256xf32, #tpu.memory_space<vmem>>, %arg9: memref<1x8x256xf32, #tpu.memory_space<vmem>>, %arg10: memref<18x26x32xf32, #tpu.memory_space<vmem>>) attributes {dimension_semantics = [#tpu.dimension_semantics<parallel>], iteration_bounds = array<i64: 2>, scalar_prefetch = 0 : i64, scratch_operands = 1 : i64, tpu.core_type = #tpu.core_type<tc>, window_params = [{transform_indices = @transform_0, window_bounds = array<i64: 1, 256, 8>}, {pipeline_mode = #tpu.pipeline_mode<synchronous>, transform_indices = @transform_1, window_bounds = array<i64: 8, 32>}, {pipeline_mode = #tpu.pipeline_mode<synchronous>, transform_indices = @transform_2, window_bounds = array<i64: 1, 32>}, {pipeline_mode = #tpu.pipeline_mode<synchronous>, transform_indices = @transform_3, window_bounds = array<i64: 9, 32>}, {pipeline_mode = #tpu.pipeline_mode<synchronous>, transform_indices = @transform_4, window_bounds = array<i64: 1, 32>}, {pipeline_mode = #tpu.pipeline_mode<synchronous>, transform_indices = @transform_5, window_bounds = array<i64: 8, 32>}, {pipeline_mode = #tpu.pipeline_mode<synchronous>, transform_indices = @transform_6, window_bounds = array<i64: 8, 1>}, {transform_indices = @transform_7, window_bounds = array<i64: 1, 8, 256>}, {transform_indices = @transform_8, window_bounds = array<i64: 1, 8, 256>}]} {
    %cst = arith.constant 0.000000e+00 : f32
    %0 = vector.broadcast %cst : f32 to vector<26x32xf32>
    %c0 = arith.constant 0 : index
    %c0_0 = arith.constant 0 : index
    %c0_1 = arith.constant 0 : index
    %1 = vector.load %arg10[%c0, %c0_0, %c0_1] : memref<18x26x32xf32, #tpu.memory_space<vmem>>, vector<1x26x32xf32>
    %2 = vector.shape_cast %1 : vector<1x26x32xf32> to vector<26x32xf32>
    %3 = vector.shape_cast %0 : vector<26x32xf32> to vector<1x26x32xf32>
    tpu.vector_store %arg10[%c0, %c0_0, %c0_1], %3 {strides = array<i32>} : memref<18x26x32xf32, #tpu.memory_space<vmem>>, vector<1x26x32xf32>,
    %cst_2 = arith.constant 0.000000e+00 : f32
    %4 = vector.broadcast %cst_2 : f32 to vector<26x32xf32>
    %c17 = arith.constant 17 : index
    %c0_3 = arith.constant 0 : index
    %c0_4 = arith.constant 0 : index
    %5 = vector.load %arg10[%c17, %c0_3, %c0_4] : memref<18x26x32xf32, #tpu.memory_space<vmem>>, vector<1x26x32xf32>
    %6 = vector.shape_cast %5 : vector<1x26x32xf32> to vector<26x32xf32>
    %7 = vector.shape_cast %4 : vector<26x32xf32> to vector<1x26x32xf32>
    tpu.vector_store %arg10[%c17, %c0_3, %c0_4], %7 {strides = array<i32>} : memref<18x26x32xf32, #tpu.memory_space<vmem>>, vector<1x26x32xf32>,
    %cst_5 = arith.constant 0.000000e+00 : f32
    %8 = vector.broadcast %cst_5 : f32 to vector<18x2x32xf32>
    %c0_6 = arith.constant 0 : index
    %c6 = arith.constant 6 : index
    %c0_7 = arith.constant 0 : index
    %9 = vector.load %arg10[%c0_6, %c6, %c0_7] : memref<18x26x32xf32, #tpu.memory_space<vmem>>, vector<18x2x32xf32>
    tpu.vector_store %arg10[%c0_6, %c6, %c0_7], %8 {strides = array<i32>} : memref<18x26x32xf32, #tpu.memory_space<vmem>>, vector<18x2x32xf32>,
    %cst_8 = arith.constant 0.000000e+00 : f32
    %10 = vector.broadcast %cst_8 : f32 to vector<18x2x32xf32>
    %c0_9 = arith.constant 0 : index
    %c24 = arith.constant 24 : index
    %c0_10 = arith.constant 0 : index
    %11 = vector.load %arg10[%c0_9, %c24, %c0_10] : memref<18x26x32xf32, #tpu.memory_space<vmem>>, vector<18x2x32xf32>
    tpu.vector_store %arg10[%c0_9, %c24, %c0_10], %10 {strides = array<i32>} : memref<18x26x32xf32, #tpu.memory_space<vmem>>, vector<18x2x32xf32>,
    %c0_11 = arith.constant 0 : index
    %c0_12 = arith.constant 0 : index
    %c0_13 = arith.constant 0 : index
    %12 = vector.load %arg1[%c0_11, %c0_12, %c0_13] : memref<1x256x8xf32, #tpu.memory_space<vmem>>, vector<1x256x8xf32>
    %13 = vector.shape_cast %12 : vector<1x256x8xf32> to vector<256x8xf32>
    %c0_14 = arith.constant 0 : index
    %c0_15 = arith.constant 0 : index
    %14 = vector.load %arg2[%c0_14, %c0_15] : memref<8x32xf32, #tpu.memory_space<vmem>>, vector<8x32xf32>
    %cst_16 = arith.constant dense<0.000000e+00> : vector<256x32xf32>
    %15 = tpu.matmul %13, %14, %cst_16 {dimension_numbers = #tpu.dot_dimension_numbers<[1], [0], [0], [1], [0, 0, 1, 1], [], []>} : vector<256x8xf32>, vector<8x32xf32>, vector<256x32xf32> -> vector<256x32xf32>
    %c0_17 = arith.constant 0 : index
    %c0_18 = arith.constant 0 : index
    %16 = vector.load %arg3[%c0_17, %c0_18] : memref<1x32xf32, #tpu.memory_space<vmem>>, vector<1x32xf32>
    %17 = vector.broadcast %16 : vector<1x32xf32> to vector<256x32xf32>
    %18 = arith.addf %15, %17 : vector<256x32xf32>
    %cst_19 = arith.constant 0.000000e+00 : f32
    %cst_20 = arith.constant 6.000000e+00 : f32
    %19 = vector.broadcast %cst_19 : f32 to vector<256x32xf32>
    %20 = arith.maximumf %19, %18 : vector<256x32xf32>
    %21 = vector.broadcast %cst_20 : f32 to vector<256x32xf32>
    %22 = arith.minimumf %21, %20 : vector<256x32xf32>
    %23 = vector.shape_cast %22 : vector<256x32xf32> to vector<16x16x32xf32>
    %c1 = arith.constant 1 : index
    %c8 = arith.constant 8 : index
    %c0_21 = arith.constant 0 : index
    %24 = vector.load %arg10[%c1, %c8, %c0_21] : memref<18x26x32xf32, #tpu.memory_space<vmem>>, vector<16x16x32xf32>
    tpu.vector_store %arg10[%c1, %c8, %c0_21], %23 {strides = array<i32>} : memref<18x26x32xf32, #tpu.memory_space<vmem>>, vector<16x16x32xf32>,
    %cst_22 = arith.constant 0.000000e+00 : f32
    %25 = vector.broadcast %cst_22 : f32 to vector<16x16x32xf32>
    %c0_23 = arith.constant 0 : index
    %c7 = arith.constant 7 : index
    %c0_24 = arith.constant 0 : index
    %26 = vector.load %arg10[%c0_23, %c7, %c0_24] : memref<18x26x32xf32, #tpu.memory_space<vmem>>, vector<18x16x32xf32>
    %27 = vector.extract_strided_slice %26 {offsets = [0, 0, 0], sizes = [16, 16, 32], strides = [1, 1, 1]} : vector<18x16x32xf32> to vector<16x16x32xf32>
    %c0_25 = arith.constant 0 : index
    %c0_26 = arith.constant 0 : index
    %28 = vector.load %arg4[%c0_25, %c0_26] : memref<9x32xf32, #tpu.memory_space<vmem>>, vector<1x32xf32>
    %29 = vector.shape_cast %28 : vector<1x32xf32> to vector<32xf32>
    %30 = vector.shape_cast %29 : vector<32xf32> to vector<1x1x32xf32>
    %31 = vector.broadcast %30 : vector<1x1x32xf32> to vector<16x16x32xf32>
    %32 = arith.mulf %27, %31 : vector<16x16x32xf32>
    %33 = arith.addf %25, %32 : vector<16x16x32xf32>
    %34 = vector.extract_strided_slice %26 {offsets = [1, 0, 0], sizes = [16, 16, 32], strides = [1, 1, 1]} : vector<18x16x32xf32> to vector<16x16x32xf32>
    %c3 = arith.constant 3 : index
    %c0_27 = arith.constant 0 : index
    %35 = vector.load %arg4[%c3, %c0_27] : memref<9x32xf32, #tpu.memory_space<vmem>>, vector<1x32xf32>
    %36 = vector.shape_cast %35 : vector<1x32xf32> to vector<32xf32>
    %37 = vector.shape_cast %36 : vector<32xf32> to vector<1x1x32xf32>
    %38 = vector.broadcast %37 : vector<1x1x32xf32> to vector<16x16x32xf32>
    %39 = arith.mulf %34, %38 : vector<16x16x32xf32>
    %40 = arith.addf %33, %39 : vector<16x16x32xf32>
    %41 = vector.extract_strided_slice %26 {offsets = [2, 0, 0], sizes = [16, 16, 32], strides = [1, 1, 1]} : vector<18x16x32xf32> to vector<16x16x32xf32>
    %c6_28 = arith.constant 6 : index
    %c0_29 = arith.constant 0 : index
    %42 = vector.load %arg4[%c6_28, %c0_29] : memref<9x32xf32, #tpu.memory_space<vmem>>, vector<1x32xf32>
    %43 = vector.shape_cast %42 : vector<1x32xf32> to vector<32xf32>
    %44 = vector.shape_cast %43 : vector<32xf32> to vector<1x1x32xf32>
    %45 = vector.broadcast %44 : vector<1x1x32xf32> to vector<16x16x32xf32>
    %46 = arith.mulf %41, %45 : vector<16x16x32xf32>
    %47 = arith.addf %40, %46 : vector<16x16x32xf32>
    %c0_30 = arith.constant 0 : index
    %c8_31 = arith.constant 8 : index
    %c0_32 = arith.constant 0 : index
    %48 = vector.load %arg10[%c0_30, %c8_31, %c0_32] : memref<18x26x32xf32, #tpu.memory_space<vmem>>, vector<18x16x32xf32>
    %49 = vector.extract_strided_slice %48 {offsets = [0, 0, 0], sizes = [16, 16, 32], strides = [1, 1, 1]} : vector<18x16x32xf32> to vector<16x16x32xf32>
    %c1_33 = arith.constant 1 : index
    %c0_34 = arith.constant 0 : index
    %50 = vector.load %arg4[%c1_33, %c0_34] : memref<9x32xf32, #tpu.memory_space<vmem>>, vector<1x32xf32>
    %51 = vector.shape_cast %50 : vector<1x32xf32> to vector<32xf32>
    %52 = vector.shape_cast %51 : vector<32xf32> to vector<1x1x32xf32>
    %53 = vector.broadcast %52 : vector<1x1x32xf32> to vector<16x16x32xf32>
    %54 = arith.mulf %49, %53 : vector<16x16x32xf32>
    %55 = arith.addf %47, %54 : vector<16x16x32xf32>
    %56 = vector.extract_strided_slice %48 {offsets = [1, 0, 0], sizes = [16, 16, 32], strides = [1, 1, 1]} : vector<18x16x32xf32> to vector<16x16x32xf32>
    %c4 = arith.constant 4 : index
    %c0_35 = arith.constant 0 : index
    %57 = vector.load %arg4[%c4, %c0_35] : memref<9x32xf32, #tpu.memory_space<vmem>>, vector<1x32xf32>
    %58 = vector.shape_cast %57 : vector<1x32xf32> to vector<32xf32>
    %59 = vector.shape_cast %58 : vector<32xf32> to vector<1x1x32xf32>
    %60 = vector.broadcast %59 : vector<1x1x32xf32> to vector<16x16x32xf32>
    %61 = arith.mulf %56, %60 : vector<16x16x32xf32>
    %62 = arith.addf %55, %61 : vector<16x16x32xf32>
    %63 = vector.extract_strided_slice %48 {offsets = [2, 0, 0], sizes = [16, 16, 32], strides = [1, 1, 1]} : vector<18x16x32xf32> to vector<16x16x32xf32>
    %c7_36 = arith.constant 7 : index
    %c0_37 = arith.constant 0 : index
    %64 = vector.load %arg4[%c7_36, %c0_37] : memref<9x32xf32, #tpu.memory_space<vmem>>, vector<1x32xf32>
    %65 = vector.shape_cast %64 : vector<1x32xf32> to vector<32xf32>
    %66 = vector.shape_cast %65 : vector<32xf32> to vector<1x1x32xf32>
    %67 = vector.broadcast %66 : vector<1x1x32xf32> to vector<16x16x32xf32>
    %68 = arith.mulf %63, %67 : vector<16x16x32xf32>
    %69 = arith.addf %62, %68 : vector<16x16x32xf32>
    %c0_38 = arith.constant 0 : index
    %c9 = arith.constant 9 : index
    %c0_39 = arith.constant 0 : index
    %70 = vector.load %arg10[%c0_38, %c9, %c0_39] : memref<18x26x32xf32, #tpu.memory_space<vmem>>, vector<18x16x32xf32>
    %71 = vector.extract_strided_slice %70 {offsets = [0, 0, 0], sizes = [16, 16, 32], strides = [1, 1, 1]} : vector<18x16x32xf32> to vector<16x16x32xf32>
    %c2 = arith.constant 2 : index
    %c0_40 = arith.constant 0 : index
    %72 = vector.load %arg4[%c2, %c0_40] : memref<9x32xf32, #tpu.memory_space<vmem>>, vector<1x32xf32>
    %73 = vector.shape_cast %72 : vector<1x32xf32> to vector<32xf32>
    %74 = vector.shape_cast %73 : vector<32xf32> to vector<1x1x32xf32>
    %75 = vector.broadcast %74 : vector<1x1x32xf32> to vector<16x16x32xf32>
    %76 = arith.mulf %71, %75 : vector<16x16x32xf32>
    %77 = arith.addf %69, %76 : vector<16x16x32xf32>
    %78 = vector.extract_strided_slice %70 {offsets = [1, 0, 0], sizes = [16, 16, 32], strides = [1, 1, 1]} : vector<18x16x32xf32> to vector<16x16x32xf32>
    %c5 = arith.constant 5 : index
    %c0_41 = arith.constant 0 : index
    %79 = vector.load %arg4[%c5, %c0_41] : memref<9x32xf32, #tpu.memory_space<vmem>>, vector<1x32xf32>
    %80 = vector.shape_cast %79 : vector<1x32xf32> to vector<32xf32>
    %81 = vector.shape_cast %80 : vector<32xf32> to vector<1x1x32xf32>
    %82 = vector.broadcast %81 : vector<1x1x32xf32> to vector<16x16x32xf32>
    %83 = arith.mulf %78, %82 : vector<16x16x32xf32>
    %84 = arith.addf %77, %83 : vector<16x16x32xf32>
    %85 = vector.extract_strided_slice %70 {offsets = [2, 0, 0], sizes = [16, 16, 32], strides = [1, 1, 1]} : vector<18x16x32xf32> to vector<16x16x32xf32>
    %c8_42 = arith.constant 8 : index
    %c0_43 = arith.constant 0 : index
    %86 = vector.load %arg4[%c8_42, %c0_43] : memref<9x32xf32, #tpu.memory_space<vmem>>, vector<1x32xf32>
    %87 = vector.shape_cast %86 : vector<1x32xf32> to vector<32xf32>
    %88 = vector.shape_cast %87 : vector<32xf32> to vector<1x1x32xf32>
    %89 = vector.broadcast %88 : vector<1x1x32xf32> to vector<16x16x32xf32>
    %90 = arith.mulf %85, %89 : vector<16x16x32xf32>
    %91 = arith.addf %84, %90 : vector<16x16x32xf32>
    %c0_44 = arith.constant 0 : index
    %c0_45 = arith.constant 0 : index
    %92 = vector.load %arg5[%c0_44, %c0_45] : memref<1x32xf32, #tpu.memory_space<vmem>>, vector<1x32xf32>
    %93 = vector.shape_cast %92 : vector<1x32xf32> to vector<1x1x32xf32>
    %94 = vector.broadcast %93 : vector<1x1x32xf32> to vector<16x16x32xf32>
    %95 = arith.addf %91, %94 : vector<16x16x32xf32>
    %cst_46 = arith.constant 0.000000e+00 : f32
    %cst_47 = arith.constant 6.000000e+00 : f32
    %96 = vector.broadcast %cst_46 : f32 to vector<16x16x32xf32>
    %97 = arith.maximumf %96, %95 : vector<16x16x32xf32>
    %98 = vector.broadcast %cst_47 : f32 to vector<16x16x32xf32>
    %99 = arith.minimumf %98, %97 : vector<16x16x32xf32>
    %c0_48 = arith.constant 0 : index
    %c0_49 = arith.constant 0 : index
    %100 = vector.load %arg6[%c0_48, %c0_49] : memref<8x32xf32, #tpu.memory_space<vmem>>, vector<8x32xf32>
    %101 = vector.shape_cast %99 : vector<16x16x32xf32> to vector<256x32xf32>
    %cst_50 = arith.constant dense<0.000000e+00> : vector<8x256xf32>
    %102 = tpu.matmul %100, %101, %cst_50 {dimension_numbers = #tpu.dot_dimension_numbers<[1], [1], [0], [0], [0, 0, 1, 0], [], []>} : vector<8x32xf32>, vector<256x32xf32>, vector<8x256xf32> -> vector<8x256xf32>
    %c0_51 = arith.constant 0 : index
    %c0_52 = arith.constant 0 : index
    %103 = vector.load %arg7[%c0_51, %c0_52] : memref<8x1xf32, #tpu.memory_space<vmem>>, vector<8x1xf32>
    %104 = vector.broadcast %103 : vector<8x1xf32> to vector<8x256xf32>
    %105 = arith.addf %102, %104 : vector<8x256xf32>
    %c0_53 = arith.constant 0 : index
    %c0_54 = arith.constant 0 : index
    %c0_55 = arith.constant 0 : index
    %106 = vector.load %arg8[%c0_53, %c0_54, %c0_55] : memref<1x8x256xf32, #tpu.memory_space<vmem>>, vector<1x8x256xf32>
    %107 = vector.shape_cast %106 : vector<1x8x256xf32> to vector<8x256xf32>
    %108 = arith.addf %105, %107 : vector<8x256xf32>
    %c0_56 = arith.constant 0 : index
    %c0_57 = arith.constant 0 : index
    %c0_58 = arith.constant 0 : index
    %109 = vector.load %arg9[%c0_56, %c0_57, %c0_58] : memref<1x8x256xf32, #tpu.memory_space<vmem>>, vector<1x8x256xf32>
    %110 = vector.shape_cast %109 : vector<1x8x256xf32> to vector<8x256xf32>
    %111 = vector.shape_cast %108 : vector<8x256xf32> to vector<1x8x256xf32>
    tpu.vector_store %arg9[%c0_56, %c0_57, %c0_58], %111 {strides = array<i32>} : memref<1x8x256xf32, #tpu.memory_space<vmem>>, vector<1x8x256xf32>,
    return
  }
  func.func @transform_0(%arg0: i32) -> (i32, i32, i32) {
    %c0_i32 = arith.constant 0 : i32
    %c0_i32_0 = arith.constant 0 : i32
    %c0_i32_1 = arith.constant 0 : i32
    return %arg0, %c0_i32, %c0_i32_0 : i32, i32, i32
  }
  func.func @transform_1(%arg0: i32) -> (i32, i32) {
    %c0_i32 = arith.constant 0 : i32
    %c0_i32_0 = arith.constant 0 : i32
    %c0_i32_1 = arith.constant 0 : i32
    return %c0_i32, %c0_i32_0 : i32, i32
  }
  func.func @transform_2(%arg0: i32) -> (i32, i32) {
    %c0_i32 = arith.constant 0 : i32
    %c0_i32_0 = arith.constant 0 : i32
    %c0_i32_1 = arith.constant 0 : i32
    return %c0_i32, %c0_i32_0 : i32, i32
  }
  func.func @transform_3(%arg0: i32) -> (i32, i32) {
    %c0_i32 = arith.constant 0 : i32
    %c0_i32_0 = arith.constant 0 : i32
    %c0_i32_1 = arith.constant 0 : i32
    return %c0_i32, %c0_i32_0 : i32, i32
  }
  func.func @transform_4(%arg0: i32) -> (i32, i32) {
    %c0_i32 = arith.constant 0 : i32
    %c0_i32_0 = arith.constant 0 : i32
    %c0_i32_1 = arith.constant 0 : i32
    return %c0_i32, %c0_i32_0 : i32, i32
  }
  func.func @transform_5(%arg0: i32) -> (i32, i32) {
    %c0_i32 = arith.constant 0 : i32
    %c0_i32_0 = arith.constant 0 : i32
    %c0_i32_1 = arith.constant 0 : i32
    return %c0_i32, %c0_i32_0 : i32, i32
  }
  func.func @transform_6(%arg0: i32) -> (i32, i32) {
    %c0_i32 = arith.constant 0 : i32
    %c0_i32_0 = arith.constant 0 : i32
    %c0_i32_1 = arith.constant 0 : i32
    return %c0_i32, %c0_i32_0 : i32, i32
  }
  func.func @transform_7(%arg0: i32) -> (i32, i32, i32) {
    %c0_i32 = arith.constant 0 : i32
    %c0_i32_0 = arith.constant 0 : i32
    %c0_i32_1 = arith.constant 0 : i32
    return %arg0, %c0_i32, %c0_i32_0 : i32, i32, i32
  }
  func.func @transform_8(%arg0: i32) -> (i32, i32, i32) {
    %c0_i32 = arith.constant 0 : i32
    %c0_i32_0 = arith.constant 0 : i32
    %c0_i32_1 = arith.constant 0 : i32
    return %arg0, %c0_i32, %c0_i32_0 : i32, i32, i32
  }
}

</mosaic_0001>

<bundles_post_ra>
// kernel: tpu_custom_call.1
= control target key start
LH: loop header
LB: loop body
LE: loop exit
PB: predicated region body
PF: predicated region fallthrough
CT: control target
= control target key end

     0   :  { %13 = vsyncpa [#allocation4], 0  ;;  %s3639_s0 = inlined_call_operand.vmem [shape: f32[2,256,8], index: 0, kind: input, shape index: {}]   ;;  %s3640_s1 = inlined_call_operand.vmem [shape: f32[8,32], index: 1, kind: input, shape index: {}]   ;;  %s3641_s2 = inlined_call_operand.vmem [shape: f32[1,32], index: 2, kind: input, shape index: {}]   ;;  %s3642_s3 = inlined_call_operand.vmem [shape: f32[9,32], index: 3, kind: input, shape index: {}]   ;;  %s3643_s4 = inlined_call_operand.vmem [shape: f32[1,32], index: 4, kind: input, shape index: {}]   ;;  %s3644_s5 = inlined_call_operand.vmem [shape: f32[8,32], index: 5, kind: input, shape index: {}]   ;;  %s3645_s6 = inlined_call_operand.vmem [shape: f32[8,1], index: 6, kind: input, shape index: {}]   ;;  %s3646_s7 = inlined_call_operand.vmem [shape: f32[2,8,256], index: 7, kind: input, shape index: {}]   ;;  %s3647_s8 = inlined_call_operand.hbm [shape: f32[2,8,256], index: 8, kind: output, shape index: {}]  }
   0x1   :  { %15 = vsyncpa [#allocation4 + $0x1], 0  ;;  %s2366_s27 = smov 0   ;;  %s2368_s28 = smov 0  }
   0x2   :  { %s2370_s29 = smov 0   ;;  %s2372_s30 = smov 0  }
   0x3 LB: > { %s2387_s9 = sadd.s32 4294967295, %s2316_s30   ;;  %s1931_s10 = sadd.s32 4294967294, %s2316_s30   ;;  %s2316_s30 = sphi %s2372_s30, %s3713_s30   ;;  %s2312_s29 = sphi %s2370_s29, %s3712_s29   ;;  %s2308_s28 = sphi %s2368_s28, %s3711_s28   ;;  %s2304_s27 = sphi %s2366_s27, %s3710_s27  }
   0x4   : > { %s2391_s11 = sadd.s32 1, %s2316_s30   ;;  %s206_s12 = sadd.s32 1, %s2312_s29 }
   0x5   : > { %s203_s13 = ssub.s32 %s2316_s30, %s2391_s11  ;;  %p216_p0 = scmp.ne.s32.totalorder %s2312_s29, %s2308_s28 }
   0x6   : > { %p204_p1 = scmp.eq.s32.totalorder %s203_s13, 0  ;;  %p217_p2 = scmp.eq.s32.totalorder %s2387_s9, 1 }
   0x7   : > { %p222_p3 = scmp.ne.s32.totalorder %s2308_s28, %s2304_s27  ;;  %p223_p4 = scmp.eq.s32.totalorder %s1931_s10, 1 }
   0x8   : > { %s2402_s14 = scalar_select %p204_p1, %s2312_s29, %s206_s12  }
   0x9   : > { %p2404_p5 = por %p217_p2, %p216_p0  ;;  %p2408_p6 = por %p223_p4, %p222_p3 }
   0xa   : > { %p1934_p7 = scmp.ge.s32.totalorder %s2316_s30, 1  ;;  %p275_p8 = scmp.lt.s32.totalorder %s2316_s30, 3 }
   0xc   : > { %p276_p9 = pnand %p1934_p7, %p275_p8 }
   0xe   : > { %279 = sbr.rel (%p276_p9) target bundleno = 688 (0x2b0), region = 52 }
  0x15   : > { %v403_v0 = vld [vmem:[%s3640_s1] sm:$0xff]  ;;  %p314_p10 = scmp.lt.s32.totalorder %s2387_s9, 1  ;;  %vm411_vm0 = vcmask 64512   ;;  %vm324_vm1 = vcmask 261120   ;;  %vm328_vm2 = vcmask 254976   ;;  %v2318_v33 = vmov 0.0  }
  0x16   : > { %2091 = vmatprep.subr.mxu0 %v403_v0  ;;  %343 = vst.msk [vmem:[#allocation2 + $0x106] sm:$0x3] %vm328_vm2, %v2318_v33  ;;  %344 = vst.msk [vmem:[#allocation2 + $0x126] sm:$0x3] %vm328_vm2, %v2318_v33  ;;  %v2538_v34 = vld [vmem:[%s3641_s2] ss:$0 sm:$0xff] }
  0x17   : > { %2092 = vmatpush3.msra.mxu0 %v403_v0  ;;  %s2419_s19 = scalar_select %p314_p10, %s2387_s9, 1  ;;  %345 = vst.msk [vmem:[#allocation2 + $0x146] sm:$0x3] %vm328_vm2, %v2318_v33  ;;  %346 = vst.msk [vmem:[#allocation2 + $0x166] sm:$0x3] %vm328_vm2, %v2318_v33 }
  0x18   : > { %347 = vst.msk [vmem:[#allocation2 + $0x186] sm:$0x3] %vm328_vm2, %v2318_v33  ;;  %361 = vst.msk [vmem:[#allocation2 + $0x118] sm:$0x3] %vm328_vm2, %v2318_v33  ;;  %v2550_v53 = vld [vmem:[%s3642_s3] ss:$0 sm:$0xff] }
  0x19   : > { %s2021_s20 = sshll.u32 %s2419_s19, 8  ;;  %362 = vst.msk [vmem:[#allocation2 + $0x138] sm:$0x3] %vm328_vm2, %v2318_v33  ;;  %363 = vst.msk [vmem:[#allocation2 + $0x158] sm:$0x3] %vm328_vm2, %v2318_v33  ;;  %s311_s24 = sand.u32 1, %s2308_s28  }
  0x1a   : > { %s2425_s23 = scalar_lea.vmem %s3639_s0, %s2021_s20  ;;  %325 = vst.msk [vmem:[#allocation2] sm:$0xff] %vm324_vm1, %v2318_v33  ;;  %326 = vst.msk [vmem:[#allocation2 + $0x8] sm:$0xff] %vm324_vm1, %v2318_v33  ;;  %v2557_v60 = vld [vmem:[%s3642_s3 + $0x1] ss:$0 sm:$0xff]  ;;  %s2022_s25 = sshll.u32 %s2419_s19, 4 }
  0x1b   : > { %v371_v1 = vld [vmem:[%s2425_s23] sm:$0xff]  ;;  %v372_v2 = vld [vmem:[%s2425_s23 + $0x8] sm:$0xff]  ;;  %v373_v3 = vld [vmem:[%s2425_s23 + $0x10] sm:$0xff]  ;;  %327 = vst.msk [vmem:[#allocation2 + $0x10] sm:$0xff] %vm324_vm1, %v2318_v33  ;;  %s1935_s26 = sshll.u32 %s311_s24, 4  ;;  %s323_s13 = scalar_lea.vmem %s3646_s7, %s2022_s25 }
  0x1c   : > { %2093 = vmatprep.mubr.msk.f32.mxu0 %vm411_vm0, %v371_v1  ;;  %v374_v4 = vld [vmem:[%s2425_s23 + $0x18] sm:$0xff]  ;;  %v375_v5 = vld [vmem:[%s2425_s23 + $0x20] sm:$0xff]  ;;  %v376_v6 = vld [vmem:[%s2425_s23 + $0x28] sm:$0xff]  ;;  %329 = vst.msk [vmem:[#allocation2 + $0x18] sm:$0x3] %vm328_vm2, %v2318_v33  ;;  %s2023_s17 = sshll.u32 %s2387_s9, 8 }
  0x1d   : > { %2094 = vmatmul.mubr.msk.f32.vlgmr.msra.gmra.mrb[0].mxu0 %vm411_vm0, %v372_v2  ;;  %v377_v7 = vld [vmem:[%s2425_s23 + $0x30] sm:$0xff]  ;;  %v378_v8 = vld [vmem:[%s2425_s23 + $0x38] sm:$0xff]  ;;  %v379_v9 = vld [vmem:[%s2425_s23 + $0x40] sm:$0xff]  ;;  %331 = vst.msk [vmem:[#allocation2 + $0x220] sm:$0xff] %vm324_vm1, %v2318_v33  ;;  %s313_s18 = scalar_lea.vmem [#allocation3], %s1935_s26  ;;  %s3597_s22 = scalar_lea.hbm %s3647_s8, %s2023_s17 }
  0x1e   : > { %2096 = vmatprep.mubr.msk.f32.mxu0 %vm411_vm0, %v373_v3  ;;  %v380_v10 = vld [vmem:[%s2425_s23 + $0x48] sm:$0xff]  ;;  %v381_v11 = vld [vmem:[%s2425_s23 + $0x50] sm:$0xff]  ;;  %v382_v12 = vld [vmem:[%s2425_s23 + $0x58] sm:$0xff]  ;;  %332 = vst.msk [vmem:[#allocation2 + $0x228] sm:$0xff] %vm324_vm1, %v2318_v33  ;;  %s1860_s20 = sshll.u32 %s313_s18, 4  ;;  %s2320_s9 = smov [#allocation3]   ;;  %s3599_s20 = int_to_ptr.vmem [resolvable:$true] %s1860_s20 }
  0x1f   : > { %v383_v13 = vld [vmem:[%s2425_s23 + $0x60] sm:$0xff]  ;;  %v384_v14 = vld [vmem:[%s2425_s23 + $0x68] sm:$0xff]  ;;  %v385_v15 = vld [vmem:[%s2425_s23 + $0x70] sm:$0xff]  ;;  %333 = vst.msk [vmem:[#allocation2 + $0x230] sm:$0xff] %vm324_vm1, %v2318_v33  ;;  %s2254_s25 = scalar_lea.vmem %s3599_s20, 256  ;;  %s2258_s26 = sshll.u32 %s2320_s9, 4  ;;  %s2259_s26 = int_to_ptr.vmem [resolvable:$false] %s2258_s26 }
  0x20   : > { %v386_v16 = vld [vmem:[%s2425_s23 + $0x78] sm:$0xff]  ;;  %v387_v17 = vld [vmem:[%s2425_s23 + $0x80] sm:$0xff]  ;;  %v388_v18 = vld [vmem:[%s2425_s23 + $0x88] sm:$0xff]  ;;  %334 = vst.msk [vmem:[#allocation2 + $0x238] sm:$0x3] %vm328_vm2, %v2318_v33  ;;  %p2255_p11 = scmp.ne.s32.totalorder %s3599_s20, %s2254_s25  ;;  %s2260_s10 = scalar_lea.vmem %s2259_s26, 512 }
  0x21   : > { %2097 = vmatmul.mubr.msk.f32.gmra.mrb[2].mxu0 %vm411_vm0, %v374_v4  ;;  %v389_v19 = vld [vmem:[%s2425_s23 + $0x90] sm:$0xff]  ;;  %v390_v20 = vld [vmem:[%s2425_s23 + $0x98] sm:$0xff]  ;;  %v391_v21 = vld [vmem:[%s2425_s23 + $0xa0] sm:$0xff]  ;;  %336 = vst.msk [vmem:[#allocation2 + $0x26] sm:$0x3] %vm328_vm2, %v2318_v33  ;;  %p2261_p0 = scmp.lt.s32.totalorder %s3599_s20, %s2259_s26  ;;  %p2262_p1 = scmp.lt.s32.totalorder %s2260_s10, %s2254_s25 }
  0x22   : > { %2099 = vmatprep.mubr.msk.f32.mxu0 %vm411_vm0, %v375_v5  ;;  %v392_v22 = vld [vmem:[%s2425_s23 + $0xa8] sm:$0xff]  ;;  %v393_v23 = vld [vmem:[%s2425_s23 + $0xb0] sm:$0xff]  ;;  %v394_v24 = vld [vmem:[%s2425_s23 + $0xb8] sm:$0xff]  ;;  %337 = vst.msk [vmem:[#allocation2 + $0x46] sm:$0x3] %vm328_vm2, %v2318_v33  ;;  %p2256_p12 = pnand %p2255_p11, %p2404_p5 }
  0x23   : > { %v395_v25 = vld [vmem:[%s2425_s23 + $0xc0] sm:$0xff]  ;;  %v396_v26 = vld [vmem:[%s2425_s23 + $0xc8] sm:$0xff]  ;;  %v397_v27 = vld [vmem:[%s2425_s23 + $0xd0] sm:$0xff]  ;;  %338 = vst.msk [vmem:[#allocation2 + $0x66] sm:$0x3] %vm328_vm2, %v2318_v33  ;;  %p2263_p2 = por %p2262_p1, %p2261_p0 }
  0x24   : > { %v398_v28 = vld [vmem:[%s2425_s23 + $0xd8] sm:$0xff]  ;;  %v399_v29 = vld [vmem:[%s2425_s23 + $0xe0] sm:$0xff]  ;;  %v400_v30 = vld [vmem:[%s2425_s23 + $0xe8] sm:$0xff]  ;;  %339 = vst.msk [vmem:[#allocation2 + $0x86] sm:$0x3] %vm328_vm2, %v2318_v33  ;;  %p2257_p13 = pneg %p2256_p12 }
  0x25   : > { %2100 = vmatmul.mubr.msk.f32.gmra.mrb[4].mxu0 %vm411_vm0, %v376_v6  ;;  %v401_v31 = vld [vmem:[%s2425_s23 + $0xf0] sm:$0xff]  ;;  %v402_v32 = vld [vmem:[%s2425_s23 + $0xf8] sm:$0xff]  ;;  %340 = vst.msk [vmem:[#allocation2 + $0xa6] sm:$0x3] %vm328_vm2, %v2318_v33  ;;  %341 = vst.msk [vmem:[#allocation2 + $0xc6] sm:$0x3] %vm328_vm2, %v2318_v33 }
  0x26   : > { %2102 = vmatprep.mubr.msk.f32.mxu0 %vm411_vm0, %v377_v7  ;;  %342 = vst.msk [vmem:[#allocation2 + $0xe6] sm:$0x3] %vm328_vm2, %v2318_v33  ;;  %348 = vst.msk [vmem:[#allocation2 + $0x1a6] sm:$0x3] %vm328_vm2, %v2318_v33  ;;  %v831_v57 = vld [vmem:[#allocation2 + $0xf] sm:$0xff]  ;;  %s1846_s23 = scalar_lea.sflag [#allocation4], %s311_s24  ;;  %p2264_p3 = pnand %p2263_p2, %p2257_p13 }
  0x27   : > { %349 = vst.msk [vmem:[#allocation2 + $0x1c6] sm:$0x3] %vm328_vm2, %v2318_v33  ;;  %350 = vst.msk [vmem:[#allocation2 + $0x1e6] sm:$0x3] %vm328_vm2, %v2318_v33  ;;  %v1073_v58 = vld [vmem:[#allocation2 + $0x8] sm:$0xff]  ;;  %v1074_v61 = vld [vmem:[#allocation2 + $0x10] sm:$0xff] }
  0x28   : > { %351 = vst.msk [vmem:[#allocation2 + $0x206] sm:$0x3] %vm328_vm2, %v2318_v33  ;;  %354 = vst.msk [vmem:[#allocation2 + $0x38] sm:$0x3] %vm328_vm2, %v2318_v33  ;;  %v1316_v62 = vld [vmem:[#allocation2 + $0x9] sm:$0xff] }
  0x29   : > { %2103 = vmatmul.mubr.msk.f32.gmra.mrb[6].mxu0 %vm411_vm0, %v378_v8  ;;  %355 = vst.msk [vmem:[#allocation2 + $0x58] sm:$0x3] %vm328_vm2, %v2318_v33  ;;  %356 = vst.msk [vmem:[#allocation2 + $0x78] sm:$0x3] %vm328_vm2, %v2318_v33  ;;  %v2563_v1 = vld [vmem:[%s3642_s3 + $0x4] ss:$0 sm:$0xff] }
  0x2a   : > { %2105 = vmatprep.mubr.msk.f32.mxu0 %vm411_vm0, %v379_v9  ;;  %357 = vst.msk [vmem:[#allocation2 + $0x98] sm:$0x3] %vm328_vm2, %v2318_v33  ;;  %358 = vst.msk [vmem:[#allocation2 + $0xb8] sm:$0x3] %vm328_vm2, %v2318_v33  ;;  %v2570_v7 = vld [vmem:[%s3642_s3 + $0x3] ss:$0 sm:$0xff]  ;;  %v872_v9 = vmul.f32 %v2550_v53, %v831_v57 }
  0x2b   : > { %359 = vst.msk [vmem:[#allocation2 + $0xd8] sm:$0x3] %vm328_vm2, %v2318_v33  ;;  %360 = vst.msk [vmem:[#allocation2 + $0xf8] sm:$0x3] %vm328_vm2, %v2318_v33  ;;  %v2575_v8 = vld [vmem:[%s3642_s3 + $0x2] ss:$0 sm:$0xff] }
  0x2c   : > { %364 = vst.msk [vmem:[#allocation2 + $0x178] sm:$0x3] %vm328_vm2, %v2318_v33  ;;  %365 = vst.msk [vmem:[#allocation2 + $0x198] sm:$0x3] %vm328_vm2, %v2318_v33  ;;  %v2642_v57 = vld [vmem:[%s3642_s3 + $0x7] ss:$0 sm:$0xff] }
  0x2d   : > { %2106 = vmatmul.mubr.msk.f32.gmra.mrb[8].mxu0 %vm411_vm0, %v380_v10  ;;  %366 = vst.msk [vmem:[#allocation2 + $0x1b8] sm:$0x3] %vm328_vm2, %v2318_v33  ;;  %367 = vst.msk [vmem:[#allocation2 + $0x1d8] sm:$0x3] %vm328_vm2, %v2318_v33  ;;  %v2579_v10 = vmul.f32 %v2557_v60, %v1073_v58 }
  0x2e   : > { %2108 = vmatprep.mubr.msk.f32.mxu0 %vm411_vm0, %v381_v11  ;;  %368 = vst.msk [vmem:[#allocation2 + $0x1f8] sm:$0x3] %vm328_vm2, %v2318_v33  ;;  %369 = vst.msk [vmem:[#allocation2 + $0x218] sm:$0x3] %vm328_vm2, %v2318_v33 }
  0x2f   : > { %335 = vst.msk [vmem:[#allocation2 + $0x6] sm:$0x3] %vm328_vm2, %v2318_v33  ;;  %353 = vst.msk [vmem:[#allocation2 + $0x18] sm:$0x3] %vm328_vm2, %v2318_v33 }
  0x30   : > { %352 = vst.msk [vmem:[#allocation2 + $0x226] sm:$0x3] %vm328_vm2, %v2318_v33  ;;  %370 = vst.msk [vmem:[#allocation2 + $0x238] sm:$0x3] %vm328_vm2, %v2318_v33 }
  0x31   : > { %2109 = vmatmul.mubr.msk.f32.gmra.mrb[10].mxu0 %vm411_vm0, %v382_v12  ;;  %3667 = vst [vmem:[#allocation6_spill] sm:$0xff] %v2550_v53  ;;  %vm2968_vm3 = vmpackc.low %vm324_vm1, %vm324_vm1 }
  0x32   : > { %2111 = vmatprep.mubr.msk.f32.mxu0 %vm411_vm0, %v383_v13 }
  0x35   : > { %2112 = vmatmul.mubr.msk.f32.gmra.mrb[12].mxu0 %vm411_vm0, %v384_v14  ;;  %v2583_v14 = vmul.f32 %v2557_v60, %v1074_v61 }
  0x36   : > { %2114 = vmatprep.mubr.msk.f32.mxu0 %vm411_vm0, %v385_v15  ;;  %v830_v54 = vld [vmem:[#allocation2 + $0x7] sm:$0xff]  ;;  %v1317_v3 = vld [vmem:[#allocation2 + $0x11] sm:$0xff] }
  0x37   : > { %v871_v2 = vmul.f32 %v2550_v53, %v830_v54 }
  0x39   : > { %2115 = vmatmul.mubr.msk.f32.gmra.mrb[14].mxu0 %vm411_vm0, %v386_v16  ;;  %v2588_v16 = vmul.f32 %v2575_v8, %v1316_v62 }
  0x3a   : > { %2117 = vmatprep.mubr.msk.f32.mxu0 %vm411_vm0, %v387_v17 }
  0x3d   : > { %2118 = vmatmul.mubr.msk.f32.gmra.mrb[16].mxu0 %vm411_vm0, %v388_v18 }
  0x3e   : > { %2120 = vmatprep.mubr.msk.f32.mxu0 %vm411_vm0, %v389_v19 }
  0x41   : > { %2121 = vmatmul.mubr.msk.f32.gmra.mrb[18].mxu0 %vm411_vm0, %v390_v20 }
  0x42   : > { %2123 = vmatprep.mubr.msk.f32.mxu0 %vm411_vm0, %v391_v21 }
  0x45   : > { %2124 = vmatmul.mubr.msk.f32.gmra.mrb[20].mxu0 %vm411_vm0, %v392_v22 }
  0x46   : > { %2126 = vmatprep.mubr.msk.f32.mxu0 %vm411_vm0, %v393_v23  ;;  %v2598_v23 = vmul.f32 %v2575_v8, %v1317_v3 }
  0x49   : > { %2127 = vmatmul.mubr.msk.f32.gmra.mrb[22].mxu0 %vm411_vm0, %v394_v24 }
  0x4a   : > { %2129 = vmatprep.mubr.msk.f32.mxu0 %vm411_vm0, %v395_v25 }
  0x4d   : > { %2130 = vmatmul.mubr.msk.f32.gmra.mrb[24].mxu0 %vm411_vm0, %v396_v26 }
  0x4e   : > { %2132 = vmatprep.mubr.msk.f32.mxu0 %vm411_vm0, %v397_v27 }
  0x51   : > { %2133 = vmatmul.mubr.msk.f32.gmra.mrb[26].mxu0 %vm411_vm0, %v398_v28 }
  0x52   : > { %2135 = vmatprep.mubr.msk.f32.mxu0 %vm411_vm0, %v399_v29 }
  0x55   : > { %2136 = vmatmul.mubr.msk.f32.gmra.mrb[28].mxu0 %vm411_vm0, %v400_v30 }
  0x56   : > { %2138 = vmatprep.mubr.msk.f32.mxu0 %vm411_vm0, %v401_v31 }
  0x59   : > { %2139 = vmatmul.mubr.msk.f32.gmra.mrb[30].mxu0 %vm411_vm0, %v402_v32 }
  0xf0   : > { %v2095_v35 = vpop.f32.mrb[0].mxu0 }
  0xf1   : > { %v580_v36 = vadd.f32 %v2095_v35, %v2538_v34  ;;  %v574_v37 = vpop.f32.mrb[1].mxu0 }
  0xf2   : > { %v575_v38 = vadd.f32 %v2538_v34, %v574_v37  ;;  %v2618_v37 = vld [vmem:[%s3642_s3 + $0x6] ss:$0 sm:$0xff] }
  0xf3   : > { %v734_v39 = vmax.f32 %v580_v36, 0.0 }
  0xf4   : > { %v733_v40 = vmax.f32 %v575_v38, 0.0  ;;  %v2098_v41 = vpop.f32.mrb[2].mxu0 }
  0xf5   : > { %v766_v42 = vmin.f32 %v734_v39, 6.0  ;;  %v590_v43 = vadd.f32 %v2098_v41, %v2538_v34  ;;  %v584_v44 = vpop.f32.mrb[3].mxu0 }
  0xf6   : > { %v765_v45 = vmin.f32 %v733_v40, 6.0  ;;  %v585_v46 = vadd.f32 %v2538_v34, %v584_v44 }
  0xf7   : > { %799 = vst.msk [vmem:[#allocation2 + $0x30] sm:$0xff] %vm324_vm1, %v766_v42  ;;  %v736_v47 = vmax.f32 %v590_v43, 0.0 }
  0xf8   : > { %798 = vst.msk [vmem:[#allocation2 + $0x28] sm:$0xff] %vm324_vm1, %v765_v45  ;;  %v735_v48 = vmax.f32 %v585_v46, 0.0  ;;  %v2101_v49 = vpop.f32.mrb[4].mxu0 }
  0xf9   : > { %v768_v50 = vmin.f32 %v736_v47, 6.0  ;;  %v600_v51 = vadd.f32 %v2101_v49, %v2538_v34  ;;  %v594_v52 = vpop.f32.mrb[5].mxu0 }
  0xfa   : > { %v767_v55 = vmin.f32 %v735_v48, 6.0  ;;  %v595_v56 = vadd.f32 %v2538_v34, %v594_v52 }
  0xfb   : > { %801 = vst.msk [vmem:[#allocation2 + $0x50] sm:$0xff] %vm324_vm1, %v768_v50  ;;  %v738_v59 = vmax.f32 %v600_v51, 0.0 }
  0xfc   : > { %800 = vst.msk [vmem:[#allocation2 + $0x48] sm:$0xff] %vm324_vm1, %v767_v55  ;;  %v737_v63 = vmax.f32 %v595_v56, 0.0  ;;  %v2104_v0 = vpop.f32.mrb[6].mxu0 }
  0xfd   : > { %v770_v4 = vmin.f32 %v738_v59, 6.0  ;;  %v610_v5 = vadd.f32 %v2104_v0, %v2538_v34  ;;  %v604_v6 = vpop.f32.mrb[7].mxu0 }
  0xfe   : > { %v769_v11 = vmin.f32 %v737_v63, 6.0  ;;  %v605_v12 = vadd.f32 %v2538_v34, %v604_v6  ;;  %v1076_v13 = vld [vmem:[#allocation2 + $0x30] sm:$0xff] }
  0xff   : > { %v2585_v15 = vld [vmem:[#allocation2 + $0x31] sm:$0xff]  ;;  %803 = vst.msk [vmem:[#allocation2 + $0x70] sm:$0xff] %vm324_vm1, %v770_v4  ;;  %v740_v17 = vmax.f32 %v610_v5, 0.0  ;;  %v832_v18 = vld [vmem:[#allocation2 + $0x27] sm:$0xff]  ;;  %v2592_v21 = vmul.f32 %v2557_v60, %v1076_v13  ;;  %v2595_v22 = vmul.f32 %v2563_v1, %v1076_v13  ;;  %v2662_v13 = vld [vmem:[%s3642_s3 + $0x5] ss:$0 sm:$0xff] }
 0x100   : > { %v833_v19 = vld [vmem:[#allocation2 + $0x2f] sm:$0xff]  ;;  %802 = vst.msk [vmem:[#allocation2 + $0x68] sm:$0xff] %vm324_vm1, %v769_v11  ;;  %v739_v24 = vmax.f32 %v605_v12, 0.0  ;;  %v2107_v25 = vpop.f32.mrb[8].mxu0  ;;  %v2602_v26 = vmul.f32 %v2550_v53, %v832_v18  ;;  %v940_v27 = vmul.f32 %v2570_v7, %v832_v18  ;;  %v2607_v28 = vmul.f32 %v2575_v8, %v2585_v15 }
 0x101   : > { %v1075_v20 = vld [vmem:[#allocation2 + $0x28] sm:$0xff]  ;;  %v772_v29 = vmin.f32 %v740_v17, 6.0  ;;  %v620_v30 = vadd.f32 %v2107_v25, %v2538_v34  ;;  %v614_v31 = vpop.f32.mrb[9].mxu0  ;;  %v2611_v32 = vmul.f32 %v2550_v53, %v833_v19  ;;  %v941_v33 = vmul.f32 %v2570_v7, %v833_v19 }
 0x102   : > { %v771_v35 = vmin.f32 %v739_v24, 6.0  ;;  %v615_v36 = vadd.f32 %v2538_v34, %v614_v31  ;;  %v972_v38 = vadd.f32 %v940_v27, %v871_v2  ;;  %v1078_v39 = vld [vmem:[#allocation2 + $0x50] sm:$0xff]  ;;  %v2621_v40 = vmul.f32 %v2557_v60, %v1075_v20 }
 0x103   : > { %805 = vst.msk [vmem:[#allocation2 + $0x90] sm:$0xff] %vm324_vm1, %v772_v29  ;;  %v742_v41 = vmax.f32 %v620_v30, 0.0  ;;  %v834_v42 = vld [vmem:[#allocation2 + $0x47] sm:$0xff]  ;;  %v835_v43 = vld [vmem:[#allocation2 + $0x4f] sm:$0xff]  ;;  %v973_v44 = vadd.f32 %v941_v33, %v872_v9  ;;  %v2625_v45 = vmul.f32 %v2557_v60, %v1078_v39  ;;  %v1183_v46 = vmul.f32 %v2563_v1, %v1075_v20 }
 0x104   : > { %804 = vst.msk [vmem:[#allocation2 + $0x88] sm:$0xff] %vm324_vm1, %v771_v35  ;;  %v741_v47 = vmax.f32 %v615_v36, 0.0  ;;  %v2110_v48 = vpop.f32.mrb[10].mxu0  ;;  %v2630_v49 = vmul.f32 %v2550_v53, %v834_v42  ;;  %v2633_v50 = vmul.f32 %v2550_v53, %v835_v43  ;;  %v1077_v51 = vld [vmem:[#allocation2 + $0x48] sm:$0xff]  ;;  %v2636_v52 = vmul.f32 %v2563_v1, %v1078_v39  ;;  %v1321_v20 = vld [vmem:[#allocation2 + $0x51] sm:$0xff] }
 0x105   : > { %3668 = vst [vmem:[#allocation7_spill] sm:$0xff] %v2625_v45  ;;  %v774_v54 = vmin.f32 %v742_v41, 6.0  ;;  %v630_v55 = vadd.f32 %v2110_v48, %v2538_v34  ;;  %v624_v56 = vpop.f32.mrb[11].mxu0  ;;  %v942_v58 = vmul.f32 %v2570_v7, %v834_v42  ;;  %v1009_v59 = vmul.f32 %v2618_v37, %v834_v42  ;;  %v1318_v2 = vld [vmem:[#allocation2 + $0x29] sm:$0xff] }
 0x106   : > { %3669 = vst [vmem:[#allocation8_spill] sm:$0xff] %v2630_v49  ;;  %3670 = vst [vmem:[#allocation9_spill] sm:$0xff] %v2633_v50  ;;  %v773_v61 = vmin.f32 %v741_v47, 6.0  ;;  %v625_v62 = vadd.f32 %v2538_v34, %v624_v56  ;;  %v2648_v63 = vmul.f32 %v2570_v7, %v835_v43  ;;  %v1010_v0 = vmul.f32 %v2618_v37, %v835_v43  ;;  %v1320_v9 = vld [vmem:[#allocation2 + $0x49] sm:$0xff] }
 0x107   : > { %807 = vst.msk [vmem:[#allocation2 + $0xb0] sm:$0xff] %vm324_vm1, %v774_v54  ;;  %v744_v3 = vmax.f32 %v630_v55, 0.0  ;;  %v1041_v4 = vadd.f32 %v1009_v59, %v972_v38  ;;  %v2653_v5 = vmul.f32 %v2557_v60, %v1077_v51  ;;  %v2656_v6 = vmul.f32 %v2563_v1, %v1077_v51  ;;  %v2697_v59 = vld [vmem:[#allocation2 + $0x67] sm:$0xff] }
 0x108   : > { %806 = vst.msk [vmem:[#allocation2 + $0xa8] sm:$0xff] %vm324_vm1, %v773_v61  ;;  %v743_v11 = vmax.f32 %v625_v62, 0.0  ;;  %v2113_v12 = vpop.f32.mrb[12].mxu0  ;;  %v1042_v17 = vadd.f32 %v1010_v0, %v973_v44  ;;  %v1252_v18 = vmul.f32 %v2642_v57, %v1077_v51  ;;  %v1253_v19 = vmul.f32 %v2642_v57, %v1078_v39  ;;  %v2680_v39 = vld [vmem:[%s3642_s3 + $0x8] ss:$0 sm:$0xff]  ;;  %3674 = vst [vmem:[#allocation13_spill] sm:$0xff] %v2697_v59 }
 0x109   : > { %3671 = vst [vmem:[#allocation10_spill] sm:$0xff] %v2653_v5  ;;  %v776_v24 = vmin.f32 %v744_v3, 6.0  ;;  %v640_v25 = vadd.f32 %v2113_v12, %v2538_v34  ;;  %v634_v27 = vpop.f32.mrb[13].mxu0  ;;  %v1146_v29 = vadd.f32 %v2579_v10, %v1041_v4  ;;  %v2669_v30 = vmul.f32 %v2575_v8, %v1318_v2  ;;  %v2699_v61 = vld [vmem:[#allocation2 + $0x6f] sm:$0xff] }
 0x10a   : > { %v775_v31 = vmin.f32 %v743_v11, 6.0  ;;  %v635_v33 = vadd.f32 %v2538_v34, %v634_v27  ;;  %v1147_v35 = vadd.f32 %v2583_v14, %v1042_v17  ;;  %v2674_v36 = vmul.f32 %v2575_v8, %v1320_v9 }
 0x10b   : > { %809 = vst.msk [vmem:[#allocation2 + $0xd0] sm:$0xff] %vm324_vm1, %v776_v24  ;;  %v746_v38 = vmax.f32 %v640_v25, 0.0  ;;  %v1215_v10 = vadd.f32 %v1183_v46, %v1146_v29  ;;  %v2683_v41 = vmul.f32 %v2575_v8, %v1321_v20  ;;  %v1426_v42 = vmul.f32 %v2662_v13, %v1318_v2  ;;  %v2713_v24 = vld [vmem:[#allocation2 + $0x68] sm:$0xff] }
 0x10c   : > { %3672 = vst [vmem:[#allocation11_spill] sm:$0xff] %v2674_v36  ;;  %808 = vst.msk [vmem:[#allocation2 + $0xc8] sm:$0xff] %vm324_vm1, %v775_v31  ;;  %v745_v14 = vmax.f32 %v635_v33, 0.0  ;;  %v2116_v43 = vpop.f32.mrb[14].mxu0  ;;  %v1216_v44 = vadd.f32 %v2595_v22, %v1147_v35  ;;  %v1427_v47 = vmul.f32 %v2662_v13, %v2585_v15  ;;  %v2691_v48 = vmul.f32 %v2662_v13, %v1320_v9  ;;  %v2724_v31 = vld [vmem:[%s3643_s4] ss:$0 sm:$0xff] }
 0x10d   : > { %3673 = vst [vmem:[#allocation12_spill] sm:$0xff] %v2683_v41  ;;  %v778_v51 = vmin.f32 %v746_v38, 6.0  ;;  %v650_v46 = vadd.f32 %v2116_v43, %v2538_v34  ;;  %v644_v54 = vpop.f32.mrb[15].mxu0  ;;  %v1284_v55 = vadd.f32 %v1252_v18, %v1215_v10  ;;  %v2695_v56 = vmul.f32 %v2662_v13, %v1321_v20  ;;  %3675 = vst [vmem:[#allocation14_spill] sm:$0xff] %v2713_v24 }
 0x10e   : > { %v777_v62 = vmin.f32 %v745_v14, 6.0  ;;  %v645_v22 = vadd.f32 %v2538_v34, %v644_v54  ;;  %v1285_v0 = vadd.f32 %v1253_v19, %v1216_v44  ;;  %v1495_v15 = vmul.f32 %v2680_v39, %v1320_v9 }
 0x10f   : > { %811 = vst.msk [vmem:[#allocation2 + $0xf0] sm:$0xff] %vm324_vm1, %v778_v51  ;;  %v748_v2 = vmax.f32 %v650_v46, 0.0  ;;  %v1389_v3 = vadd.f32 %v2588_v16, %v1284_v55  ;;  %v1496_v4 = vmul.f32 %v2680_v39, %v1321_v20  ;;  %v974_v11 = vadd.f32 %v942_v58, %v2602_v26  ;;  %v2718_v58 = vld [vmem:[#allocation2 + $0x70] sm:$0xff] }
 0x110   : > { %810 = vst.msk [vmem:[#allocation2 + $0xe8] sm:$0xff] %vm324_vm1, %v777_v62  ;;  %v747_v12 = vmax.f32 %v645_v22, 0.0  ;;  %v2119_v17 = vpop.f32.mrb[16].mxu0  ;;  %v1390_v18 = vadd.f32 %v2598_v23, %v1285_v0  ;;  %v1011_v19 = vmul.f32 %v2618_v37, %v2697_v59  ;;  %v1012_v9 = vmul.f32 %v2618_v37, %v2699_v61  ;;  %3676 = vst [vmem:[#allocation15_spill] sm:$0xff] %v2718_v58  ;;  %v2738_v0 = vld [vmem:[#allocation2 + $0x71] sm:$0xff] }
 0x111   : > { %v780_v25 = vmin.f32 %v748_v2, 6.0  ;;  %v660_v16 = vadd.f32 %v2119_v17, %v2538_v34  ;;  %v654_v20 = vpop.f32.mrb[17].mxu0  ;;  %v1458_v27 = vadd.f32 %v1426_v42, %v1389_v3  ;;  %v975_v26 = vadd.f32 %v2648_v63, %v2611_v32  ;;  %3678 = vst [vmem:[#allocation17_spill] sm:$0xff] %v2738_v0 }
 0x112   : > { %v779_v29 = vmin.f32 %v747_v12, 6.0  ;;  %v655_v23 = vadd.f32 %v2538_v34, %v654_v20  ;;  %v1459_v33 = vadd.f32 %v1427_v47, %v1390_v18  ;;  %v1043_v35 = vadd.f32 %v1011_v19, %v974_v11  ;;  %v2733_v47 = vld [vmem:[#allocation2 + $0x69] sm:$0xff] }
 0x113   : > { %813 = vst.msk [vmem:[#allocation2 + $0x110] sm:$0xff] %vm324_vm1, %v780_v25  ;;  %v750_v38 = vmax.f32 %v660_v16, 0.0  ;;  %v1527_v10 = vadd.f32 %v1495_v15, %v1458_v27  ;;  %v1044_v42 = vadd.f32 %v1012_v9, %v975_v26  ;;  %v1254_v32 = vmul.f32 %v2642_v57, %v2713_v24  ;;  %3677 = vst [vmem:[#allocation16_spill] sm:$0xff] %v2733_v47 }
 0x114   : > { %812 = vst.msk [vmem:[#allocation2 + $0x108] sm:$0xff] %vm324_vm1, %v779_v29  ;;  %v749_v63 = vmax.f32 %v655_v23, 0.0  ;;  %v2122_v14 = vpop.f32.mrb[18].mxu0  ;;  %v1528_v43 = vadd.f32 %v1496_v4, %v1459_v33  ;;  %v1148_v44 = vadd.f32 %v2621_v40, %v1043_v35  ;;  %v1255_v51 = vmul.f32 %v2642_v57, %v2718_v58 }
 0x115   : > { %v782_v46 = vmin.f32 %v750_v38, 6.0  ;;  %v670_v54 = vadd.f32 %v2122_v14, %v2538_v34  ;;  %v664_v55 = vpop.f32.mrb[19].mxu0  ;;  %v1566_v62 = vadd.f32 %v2724_v31, %v1527_v10  ;;  %v1149_v22 = vadd.f32 %v2592_v21, %v1044_v42 }
 0x116   : > { %v781_v15 = vmin.f32 %v749_v63, 6.0  ;;  %v665_v2 = vadd.f32 %v2538_v34, %v664_v55  ;;  %v1567_v40 = vadd.f32 %v2724_v31, %v1528_v43  ;;  %v1217_v3 = vadd.f32 %v2656_v6, %v1148_v44 }
 0x117   : > { %815 = vst.msk [vmem:[#allocation2 + $0x130] sm:$0xff] %vm324_vm1, %v782_v46  ;;  %v752_v4 = vmax.f32 %v670_v54, 0.0  ;;  %v1598_v11 = vmax.f32 %v1566_v62, 0.0  ;;  %v1218_v12 = vadd.f32 %v2636_v52, %v1149_v22  ;;  %v2747_v17 = vmul.f32 %v2680_v39, %v2733_v47 }
 0x118   : > { %814 = vst.msk [vmem:[#allocation2 + $0x128] sm:$0xff] %vm324_vm1, %v781_v15  ;;  %v751_v21 = vmax.f32 %v665_v2, 0.0  ;;  %v2125_v18 = vpop.f32.mrb[20].mxu0  ;;  %v1599_v19 = vmax.f32 %v1567_v40, 0.0  ;;  %v1286_v9 = vadd.f32 %v1254_v32, %v1217_v3  ;;  %v2752_v25 = vmul.f32 %v2680_v39, %v2738_v0 }
 0x119   : > { %v784_v6 = vmin.f32 %v752_v4, 6.0  ;;  %v680_v16 = vadd.f32 %v2125_v18, %v2538_v34  ;;  %v674_v20 = vpop.f32.mrb[21].mxu0  ;;  %v1287_v27 = vadd.f32 %v1255_v51, %v1218_v12  ;;  %v2757_v52 = vmul.f32 %v2570_v7, %v2697_v59 }
 0x11a   : > { %v783_v26 = vmin.f32 %v751_v21, 6.0  ;;  %v675_v29 = vadd.f32 %v2538_v34, %v674_v20  ;;  %v1090_v23 = vld [vmem:[#allocation2 + $0x110] sm:$0xff]  ;;  %v2760_v35 = vmin.f32 %v1598_v11, 6.0  ;;  %v2762_v38 = vmin.f32 %v1599_v19, 6.0 }
 0x11b   : > { %3679 = vst [vmem:[#allocation18_spill] sm:$0xff] %v2757_v52  ;;  %v1333_v33 = vld [vmem:[#allocation2 + $0x111] sm:$0xff]  ;;  %817 = vst.msk [vmem:[#allocation2 + $0x150] sm:$0xff] %vm324_vm1, %v784_v6  ;;  %v754_v10 = vmax.f32 %v680_v16, 0.0  ;;  %v846_v42 = vld [vmem:[#allocation2 + $0x107] sm:$0xff]  ;;  %v2766_v14 = vmul.f32 %v2557_v60, %v1090_v23  ;;  %v2772_v44 = vadd.f32 %v2669_v30, %v1286_v9  ;;  %v2778_v22 = vadd.f32 %v2607_v28, %v1287_v27 }
 0x11c   : > { %3680 = vst [vmem:[#allocation19_spill] sm:$0xff] %v2760_v35  ;;  %3681 = vst [vmem:[#allocation20_spill] sm:$0xff] %v2762_v38  ;;  %v847_v32 = vld [vmem:[#allocation2 + $0x10f] sm:$0xff]  ;;  %v2769_v43 = vmul.f32 %v2575_v8, %v1333_v33  ;;  %v753_v51 = vmax.f32 %v675_v29, 0.0  ;;  %v2128_v46 = vpop.f32.mrb[22].mxu0  ;;  %v887_v54 = vmul.f32 %v2550_v53, %v846_v42  ;;  %v2782_v3 = vmul.f32 %v2570_v7, %v846_v42 }
 0x11d   : > { %v1089_v63 = vld [vmem:[#allocation2 + $0x108] sm:$0xff]  ;;  %816 = vst.msk [vmem:[#allocation2 + $0x148] sm:$0xff] %vm324_vm1, %v783_v26  ;;  %v888_v55 = vmul.f32 %v2550_v53, %v847_v32  ;;  %v786_v15 = vmin.f32 %v754_v10, 6.0  ;;  %v690_v2 = vadd.f32 %v2128_v46, %v2538_v34  ;;  %v684_v40 = vpop.f32.mrb[23].mxu0 }
 0x11e   : > { %v1332_v62 = vld [vmem:[#allocation2 + $0x109] sm:$0xff]  ;;  %3682 = vst [vmem:[#allocation21_spill] sm:$0xff] %v2782_v3  ;;  %v2785_v30 = vmul.f32 %v2557_v60, %v1089_v63  ;;  %v785_v4 = vmin.f32 %v753_v51, 6.0  ;;  %v685_v11 = vadd.f32 %v2538_v34, %v684_v40  ;;  %v2788_v21 = vld [vmem:[#allocation2 + $0x131] sm:$0xff] }
 0x11f   : > { %v1092_v12 = vld [vmem:[#allocation2 + $0x130] sm:$0xff]  ;;  %v2791_v18 = vmul.f32 %v2575_v8, %v1332_v62  ;;  %819 = vst.msk [vmem:[#allocation2 + $0x170] sm:$0xff] %vm324_vm1, %v786_v15  ;;  %v756_v19 = vmax.f32 %v690_v2, 0.0  ;;  %v848_v9 = vld [vmem:[#allocation2 + $0x127] sm:$0xff]  ;;  %v2804_v26 = vmul.f32 %v2575_v8, %v2788_v21 }
 0x120   : > { %v849_v6 = vld [vmem:[#allocation2 + $0x12f] sm:$0xff]  ;;  %v2797_v20 = vmul.f32 %v2557_v60, %v1092_v12  ;;  %v2800_v27 = vmul.f32 %v2563_v1, %v1092_v12  ;;  %818 = vst.msk [vmem:[#allocation2 + $0x168] sm:$0xff] %vm324_vm1, %v785_v4  ;;  %v755_v29 = vmax.f32 %v685_v11, 0.0  ;;  %v2131_v23 = vpop.f32.mrb[24].mxu0  ;;  %v2808_v33 = vmul.f32 %v2550_v53, %v848_v9 }
 0x121   : > { %v1091_v16 = vld [vmem:[#allocation2 + $0x128] sm:$0xff]  ;;  %v2811_v10 = vmul.f32 %v2550_v53, %v849_v6  ;;  %v956_v42 = vmul.f32 %v2570_v7, %v848_v9  ;;  %v788_v32 = vmin.f32 %v756_v19, 6.0  ;;  %v700_v63 = vadd.f32 %v2131_v23, %v2538_v34  ;;  %v694_v51 = vpop.f32.mrb[25].mxu0 }
 0x122   : > { %v957_v46 = vmul.f32 %v2570_v7, %v849_v6  ;;  %v2817_v62 = vmul.f32 %v2557_v60, %v1091_v16  ;;  %v787_v15 = vmin.f32 %v755_v29, 6.0  ;;  %v695_v2 = vadd.f32 %v2538_v34, %v694_v51  ;;  %v2820_v4 = vld [vmem:[#allocation2 + $0x150] sm:$0xff] }
 0x123   : > { %v988_v40 = vadd.f32 %v956_v42, %v887_v54  ;;  %v1199_v11 = vmul.f32 %v2563_v1, %v1091_v16  ;;  %821 = vst.msk [vmem:[#allocation2 + $0x190] sm:$0xff] %vm324_vm1, %v788_v32  ;;  %v758_v12 = vmax.f32 %v700_v63, 0.0  ;;  %v2826_v6 = vmul.f32 %v2557_v60, %v2820_v4 }
 0x124   : > { %v850_v19 = vld [vmem:[#allocation2 + $0x147] sm:$0xff]  ;;  %v851_v9 = vld [vmem:[#allocation2 + $0x14f] sm:$0xff]  ;;  %v989_v23 = vadd.f32 %v957_v46, %v888_v55  ;;  %v2830_v29 = vmul.f32 %v2563_v1, %v2820_v4  ;;  %820 = vst.msk [vmem:[#allocation2 + $0x188] sm:$0xff] %vm324_vm1, %v787_v15  ;;  %v757_v54 = vmax.f32 %v695_v2, 0.0  ;;  %v2134_v42 = vpop.f32.mrb[26].mxu0 }
 0x125   : > { %v1093_v28 = vld [vmem:[#allocation2 + $0x148] sm:$0xff]  ;;  %v891_v16 = vmul.f32 %v2550_v53, %v850_v19  ;;  %v892_v32 = vmul.f32 %v2550_v53, %v851_v9  ;;  %v2836_v63 = vmul.f32 %v2570_v7, %v850_v19  ;;  %v790_v55 = vmin.f32 %v758_v12, 6.0  ;;  %v704_v46 = vpop.f32.mrb[27].mxu0 }
 0x126   : > { %v710_v51 = vadd.f32 %v2134_v42, %v2538_v34  ;;  %v2840_v3 = vmul.f32 %v2570_v7, %v851_v9  ;;  %v1025_v59 = vmul.f32 %v2618_v37, %v850_v19  ;;  %v789_v41 = vmin.f32 %v757_v54, 6.0  ;;  %v2845_v36 = vld [vmem:[#allocation2 + $0x170] sm:$0xff] }
 0x127   : > { %v705_v15 = vadd.f32 %v2538_v34, %v704_v46  ;;  %v1026_v2 = vmul.f32 %v2618_v37, %v851_v9  ;;  %v1134_v53 = vmul.f32 %v2557_v60, %v1093_v28  ;;  %823 = vst.msk [vmem:[#allocation2 + $0x1b0] sm:$0xff] %vm324_vm1, %v790_v55  ;;  %v2849_v0 = vld [vmem:[#allocation2 + $0x167] sm:$0xff]  ;;  %v2851_v42 = vld [vmem:[#allocation2 + $0x16f] sm:$0xff]  ;;  %v2856_v19 = vmul.f32 %v2563_v1, %v1093_v28 }
 0x128   : > { %v760_v12 = vmax.f32 %v710_v51, 0.0  ;;  %v1057_v47 = vadd.f32 %v1025_v59, %v988_v40  ;;  %v2853_v45 = vld [vmem:[#allocation2 + $0x168] sm:$0xff]  ;;  %v1204_v9 = vmul.f32 %v2563_v1, %v2845_v36  ;;  %822 = vst.msk [vmem:[#allocation2 + $0x1a8] sm:$0xff] %vm324_vm1, %v789_v41  ;;  %v2137_v46 = vpop.f32.mrb[28].mxu0  ;;  %v960_v55 = vmul.f32 %v2570_v7, %v2849_v0 }
 0x129   : > { %v759_v54 = vmax.f32 %v705_v15, 0.0  ;;  %v961_v51 = vmul.f32 %v2570_v7, %v2851_v42  ;;  %v1058_v5 = vadd.f32 %v1026_v2, %v989_v23  ;;  %v720_v40 = vadd.f32 %v2137_v46, %v2538_v34  ;;  %v714_v58 = vpop.f32.mrb[29].mxu0 }
 0x12a   : > { %v792_v59 = vmin.f32 %v760_v12, 6.0  ;;  %v1162_v24 = vadd.f32 %v2785_v30, %v1057_v47  ;;  %v1203_v35 = vmul.f32 %v2563_v1, %v2853_v45  ;;  %v715_v41 = vadd.f32 %v2538_v34, %v714_v58  ;;  %v2870_v52 = vld [vmem:[#allocation2 + $0x190] sm:$0xff] }
 0x12b   : > { %v791_v38 = vmin.f32 %v759_v54, 6.0  ;;  %v992_v15 = vadd.f32 %v960_v55, %v891_v16  ;;  %v993_v50 = vadd.f32 %v961_v51, %v892_v32  ;;  %v762_v49 = vmax.f32 %v720_v40, 0.0  ;;  %v2873_v23 = vld [vmem:[#allocation2 + $0x187] sm:$0xff]  ;;  %v2875_v2 = vld [vmem:[#allocation2 + $0x18f] sm:$0xff] }
 0x12c   : > { %825 = vst.msk [vmem:[#allocation2 + $0x1d0] sm:$0xff] %vm324_vm1, %v792_v59  ;;  %3683 = vst [vmem:[#allocation22_spill] sm:$0xff] %v2873_v23  ;;  %v2877_v12 = vld [vmem:[#allocation2 + $0x188] sm:$0xff]  ;;  %v2881_v47 = vmul.f32 %v2557_v60, %v2870_v52  ;;  %v1163_v30 = vadd.f32 %v2766_v14, %v1058_v5  ;;  %v1231_v58 = vadd.f32 %v1199_v11, %v1162_v24  ;;  %v761_v16 = vmax.f32 %v715_v41, 0.0  ;;  %v2140_v32 = vpop.f32.mrb[30].mxu0 }
 0x12d   : > { %3684 = vst [vmem:[#allocation23_spill] sm:$0xff] %v2875_v2  ;;  %824 = vst.msk [vmem:[#allocation2 + $0x1c8] sm:$0xff] %vm324_vm1, %v791_v38  ;;  %v1029_v54 = vmul.f32 %v2618_v37, %v2873_v23  ;;  %v1030_v46 = vmul.f32 %v2618_v37, %v2875_v2  ;;  %v2891_v55 = vmul.f32 %v2557_v60, %v2877_v12  ;;  %v794_v51 = vmin.f32 %v762_v49, 6.0  ;;  %v724_v40 = vpop.f32.mrb[31].mxu0  ;;  %v1336_v23 = vld [vmem:[#allocation2 + $0x149] sm:$0xff] }
 0x12e   : > { %3685 = vst [vmem:[#allocation24_spill] sm:$0xff] %v2881_v47  ;;  %v730_v59 = vadd.f32 %v2140_v32, %v2538_v34  ;;  %v1232_v5 = vadd.f32 %v2800_v27, %v1163_v30  ;;  %v1268_v24 = vmul.f32 %v2642_v57, %v1093_v28  ;;  %v793_v38 = vmin.f32 %v761_v16, 6.0  ;;  %v1334_v47 = vld [vmem:[#allocation2 + $0x129] sm:$0xff]  ;;  %v1337_v28 = vld [vmem:[#allocation2 + $0x151] sm:$0xff] }
 0x12f   : > { %3686 = vst [vmem:[#allocation25_spill] sm:$0xff] %v2891_v55  ;;  %v725_v14 = vadd.f32 %v2538_v34, %v724_v40  ;;  %v1061_v11 = vadd.f32 %v1029_v54, %v992_v15  ;;  %v1062_v41 = vadd.f32 %v1030_v46, %v993_v50  ;;  %827 = vst.msk [vmem:[#allocation2 + $0x1f0] sm:$0xff] %vm324_vm1, %v794_v51 }
 0x130   : > { %v764_v2 = vmax.f32 %v730_v59, 0.0  ;;  %v1269_v49 = vmul.f32 %v2642_v57, %v2820_v4  ;;  %v1272_v32 = vmul.f32 %v2642_v57, %v2877_v12  ;;  %v1273_v27 = vmul.f32 %v2642_v57, %v2870_v52  ;;  %826 = vst.msk [vmem:[#allocation2 + $0x1e8] sm:$0xff] %vm324_vm1, %v793_v38 }
 0x131   : > { %v763_v34 = vmax.f32 %v725_v14, 0.0  ;;  %v1166_v15 = vadd.f32 %v1134_v53, %v1061_v11  ;;  %v1167_v50 = vadd.f32 %v2826_v6, %v1062_v41  ;;  %v1300_v30 = vadd.f32 %v1268_v24, %v1231_v58  ;;  %v2928_v11 = vld [vmem:[#allocation2 + $0x171] sm:$0xff] }
 0x132   : > { %v796_v16 = vmin.f32 %v764_v2, 6.0  ;;  %v1301_v54 = vadd.f32 %v1269_v49, %v1232_v5  ;;  %v2907_v46 = vmul.f32 %v2575_v8, %v1334_v47  ;;  %v1377_v4 = vmul.f32 %v2575_v8, %v1336_v23 }
 0x133   : > { %v795_v51 = vmin.f32 %v763_v34, 6.0  ;;  %v1235_v59 = vadd.f32 %v1203_v35, %v1166_v15  ;;  %v1236_v40 = vadd.f32 %v1204_v9, %v1167_v50  ;;  %v1378_v55 = vmul.f32 %v2575_v8, %v1337_v28 }
 0x134   : > { %829 = vst.msk [vmem:[#allocation2 + $0x210] sm:$0xff] %vm324_vm1, %v796_v16  ;;  %v1405_v38 = vadd.f32 %v2791_v18, %v1300_v30  ;;  %v1406_v53 = vadd.f32 %v2769_v43, %v1301_v54  ;;  %v1442_v6 = vmul.f32 %v2662_v13, %v1334_v47  ;;  %v1443_v2 = vmul.f32 %v2662_v13, %v2788_v21  ;;  %v2926_v47 = vld [vmem:[#allocation2 + $0x169] sm:$0xff] }
 0x135   : > { %828 = vst.msk [vmem:[#allocation2 + $0x208] sm:$0xff] %vm324_vm1, %v795_v51  ;;  %v1304_v58 = vadd.f32 %v1272_v32, %v1235_v59  ;;  %v1305_v5 = vadd.f32 %v1273_v27, %v1236_v40  ;;  %v2919_v35 = vmul.f32 %v2662_v13, %v1336_v23  ;;  %v2922_v9 = vmul.f32 %v2662_v13, %v1337_v28 }
 0x136   : > { %v1474_v24 = vadd.f32 %v1442_v6, %v1405_v38  ;;  %v1475_v14 = vadd.f32 %v1443_v2, %v1406_v53  ;;  %v1511_v18 = vmul.f32 %v2680_v39, %v1336_v23  ;;  %v1512_v43 = vmul.f32 %v2680_v39, %v1337_v28  ;;  %v2958_v6 = vld [vmem:[#allocation2 + $0x189] sm:$0xff]  ;;  %v2960_v2 = vld [vmem:[#allocation2 + $0x191] sm:$0xff] }
 0x137   : > { %v1409_v21 = vadd.f32 %v1377_v4, %v1304_v58  ;;  %v1410_v41 = vadd.f32 %v1378_v55, %v1305_v5  ;;  %v990_v49 = vadd.f32 %v2836_v63, %v2808_v33  ;;  %v991_v32 = vadd.f32 %v2840_v3, %v2811_v10 }
 0x138   : > { %v1543_v27 = vadd.f32 %v1511_v18, %v1474_v24  ;;  %v1544_v34 = vadd.f32 %v1512_v43, %v1475_v14  ;;  %v1027_v15 = vmul.f32 %v2618_v37, %v2849_v0  ;;  %v1028_v23 = vmul.f32 %v2618_v37, %v2851_v42 }
 0x139   : > { %v1270_v28 = vmul.f32 %v2642_v57, %v2853_v45  ;;  %v1271_v55 = vmul.f32 %v2642_v57, %v2845_v36  ;;  %v1513_v33 = vmul.f32 %v2680_v39, %v2926_v47  ;;  %v1514_v3 = vmul.f32 %v2680_v39, %v2928_v11 }
 0x13a   : > { %v1582_v10 = vadd.f32 %v2724_v31, %v1543_v27  ;;  %v1583_v63 = vadd.f32 %v2724_v31, %v1544_v34  ;;  %v1059_v50 = vadd.f32 %v1027_v15, %v990_v49  ;;  %v1060_v30 = vadd.f32 %v1028_v23, %v991_v32  ;;  %v2980_v34 = vld [vmem:[#allocation2 + $0x87] sm:$0xff]  ;;  %v2982_v15 = vld [vmem:[#allocation2 + $0x8f] sm:$0xff] }
 0x13b   : > { %v1460_v16 = vadd.f32 %v2691_v48, %v2772_v44  ;;  %v1461_v54 = vadd.f32 %v2695_v56, %v2778_v22  ;;  %v1446_v4 = vmul.f32 %v2662_v13, %v2926_v47  ;;  %v1447_v51 = vmul.f32 %v2662_v13, %v2928_v11  ;;  %v1662_v23 = vld [vmem:[%s3644_s5] sm:$0xff] }
 0x13c   : > { %v1614_v59 = vmax.f32 %v1582_v10, 0.0  ;;  %v1615_v40 = vmax.f32 %v1583_v63, 0.0  ;;  %v1164_v38 = vadd.f32 %v2817_v62, %v1059_v50  ;;  %v1165_v53 = vadd.f32 %v2797_v20, %v1060_v30  ;;  %v3689_v10 = vld [vmem:[#allocation8_spill] sm:$0xff]  ;;  %v3690_v63 = vld [vmem:[#allocation18_spill] sm:$0xff]  ;;  %v3691_v30 = vld [vmem:[#allocation9_spill] sm:$0xff]  ;;  %2089 = vmatprep.mubr.msk.f32.mxu1 %vm324_vm1, %v1662_v23 }
 0x13d   : > { %v1529_v48 = vadd.f32 %v2747_v17, %v1460_v16  ;;  %v1530_v56 = vadd.f32 %v2752_v25, %v1461_v54  ;;  %v1478_v44 = vadd.f32 %v1446_v4, %v1409_v21  ;;  %v1479_v22 = vadd.f32 %v1447_v51, %v1410_v41  ;;  %v3692_v54 = vld [vmem:[#allocation20_spill] sm:$0xff]  ;;  %v3693_v4 = vld [vmem:[#allocation19_spill] sm:$0xff] }
 0x13e   : > { %v1646_v58 = vmin.f32 %v1614_v59, 6.0  ;;  %v1647_v5 = vmin.f32 %v1615_v40, 6.0  ;;  %v1233_v24 = vadd.f32 %v2856_v19, %v1164_v38  ;;  %v1234_v14 = vadd.f32 %v2830_v29, %v1165_v53  ;;  %v3028_v23 = vld [vmem:[#allocation2 + $0x89] sm:$0xff] }
 0x13f   : > { %v1568_v62 = vadd.f32 %v2724_v31, %v1529_v48  ;;  %v1569_v17 = vadd.f32 %v2724_v31, %v1530_v56  ;;  %v1515_v25 = vmul.f32 %v2680_v39, %v2958_v6  ;;  %v1516_v18 = vmul.f32 %v2680_v39, %v2960_v2 }
 0x140   : > { %v2141_v43 = vpack.c.bf16 %v1647_v5, %v1646_v58  ;;  %v1302_v19 = vadd.f32 %v1270_v28, %v1233_v24  ;;  %v1303_v21 = vadd.f32 %v1271_v55, %v1234_v14  ;;  %v945_v29 = vmul.f32 %v2570_v7, %v2699_v61  ;;  %v3695_v24 = vld [vmem:[#allocation14_spill] sm:$0xff] }
 0x141   : > { %v1600_v41 = vmax.f32 %v1568_v62, 0.0  ;;  %v1601_v49 = vmax.f32 %v1569_v17, 0.0  ;;  %v1547_v32 = vadd.f32 %v1515_v25, %v1478_v44  ;;  %v1548_v27 = vadd.f32 %v1516_v18, %v1479_v22  ;;  %v3012_v44 = vld [vmem:[#allocation2 + $0x88] sm:$0xff]  ;;  %v3018_v25 = vld [vmem:[#allocation2 + $0x90] sm:$0xff] }
 0x142   : > { %2143 = vmatprep.subr.msk.bf16.mxu1 %vm2968_vm3, %v2141_v43  ;;  %v1407_v28 = vadd.f32 %v2907_v46, %v1302_v19  ;;  %v1408_v55 = vadd.f32 %v2804_v26, %v1303_v21  ;;  %v976_v50 = vadd.f32 %v3690_v63, %v3689_v10  ;;  %v977_v16 = vadd.f32 %v945_v29, %v3691_v30  ;;  %v3696_v19 = vld [vmem:[#allocation15_spill] sm:$0xff]  ;;  %v3699_v63 = vld [vmem:[#allocation16_spill] sm:$0xff]  ;;  %v3700_v30 = vld [vmem:[#allocation17_spill] sm:$0xff] }
 0x143   : > { %v3694_v51 = vpack.c.bf16 %v3692_v54, %v3693_v4  ;;  %v2999_v59 = vmin.f32 %v1600_v41, 6.0  ;;  %v3001_v40 = vmin.f32 %v1601_v49, 6.0  ;;  %v1586_v38 = vadd.f32 %v2724_v31, %v1547_v32  ;;  %v3697_v32 = vld [vmem:[#allocation10_spill] sm:$0xff] }
 0x144   : > { %v1587_v46 = vadd.f32 %v2724_v31, %v1548_v27  ;;  %v1476_v26 = vadd.f32 %v2919_v35, %v1407_v28  ;;  %v1477_v53 = vadd.f32 %v2922_v9, %v1408_v55  ;;  %v1013_v48 = vmul.f32 %v2618_v37, %v2980_v34  ;;  %v3030_v28 = vld [vmem:[#allocation2 + $0x91] sm:$0xff] }
 0x145   : > { %2146 = vmatpush3.bf16.xpose.msk.msra.mxu1 %vm2968_vm3, %v3694_v51  ;;  %v1014_v56 = vmul.f32 %v2618_v37, %v2982_v15  ;;  %v2150_v22 = vpack.c.bf16 %v3001_v40, %v2999_v59  ;;  %v1618_v58 = vmax.f32 %v1586_v38, 0.0  ;;  %v1187_v14 = vmul.f32 %v2563_v1, %v3695_v24  ;;  %v3038_v40 = vld [vmem:[#allocation2 + $0x1a7] sm:$0xff]  ;;  %v3040_v38 = vld [vmem:[#allocation2 + $0x1af] sm:$0xff] }
 0x146   : > { %v1619_v5 = vmax.f32 %v1587_v46, 0.0  ;;  %v1545_v62 = vadd.f32 %v1513_v33, %v1476_v26  ;;  %v1546_v35 = vadd.f32 %v1514_v3, %v1477_v53  ;;  %v1045_v17 = vadd.f32 %v1013_v48, %v976_v50  ;;  %v3698_v33 = vld [vmem:[#allocation7_spill] sm:$0xff]  ;;  %v3701_v53 = vld [vmem:[#allocation6_spill] sm:$0xff] }
 0x147   : > { %v1046_v9 = vadd.f32 %v1014_v56, %v977_v16  ;;  %v1650_v18 = vmin.f32 %v1618_v58, 6.0  ;;  %v1188_v21 = vmul.f32 %v2563_v1, %v3696_v19  ;;  %v1256_v29 = vmul.f32 %v2642_v57, %v3012_v44 }
 0x148   : > { %v1651_v43 = vmin.f32 %v1619_v5, 6.0  ;;  %v1584_v41 = vadd.f32 %v2724_v31, %v1545_v62  ;;  %v1585_v49 = vadd.f32 %v2724_v31, %v1546_v35  ;;  %v1150_v27 = vadd.f32 %v3697_v32, %v1045_v17  ;;  %v3702_v35 = vld [vmem:[#allocation22_spill] sm:$0xff]  ;;  %v3705_v32 = vld [vmem:[#allocation12_spill] sm:$0xff] }
 0x149   : > { %v1151_v3 = vadd.f32 %v3698_v33, %v1046_v9  ;;  %v1257_v10 = vmul.f32 %v2642_v57, %v3018_v25  ;;  %v1430_v50 = vmul.f32 %v2662_v13, %v3699_v63  ;;  %v1431_v16 = vmul.f32 %v2662_v13, %v3700_v30  ;;  %v3703_v9 = vld [vmem:[#allocation23_spill] sm:$0xff] }
 0x14a   : > { %v2153_v55 = vpack.c.bf16 %v1651_v43, %v1650_v18  ;;  %v1616_v54 = vmax.f32 %v1584_v41, 0.0  ;;  %v1617_v4 = vmax.f32 %v1585_v49, 0.0  ;;  %v1219_v51 = vadd.f32 %v1187_v14, %v1150_v27  ;;  %v3062_v27 = vld [vmem:[#allocation2 + $0x1b0] sm:$0xff] }
 0x14b   : > { %v1220_v59 = vadd.f32 %v1188_v21, %v1151_v3  ;;  %v1499_v46 = vmul.f32 %v2680_v39, %v3028_v23  ;;  %v1500_v26 = vmul.f32 %v2680_v39, %v3030_v28  ;;  %v893_v48 = vmul.f32 %v3701_v53, %v2849_v0  ;;  %v3058_v0 = vld [vmem:[#allocation2 + $0x1a8] sm:$0xff] }
 0x14c   : > { %v894_v56 = vmul.f32 %v3701_v53, %v2851_v42  ;;  %v1648_v58 = vmin.f32 %v1616_v54, 6.0  ;;  %v1649_v5 = vmin.f32 %v1617_v4, 6.0  ;;  %v1288_v14 = vadd.f32 %v1256_v29, %v1219_v51  ;;  %v3704_v42 = vld [vmem:[#allocation11_spill] sm:$0xff] }
 0x14d   : > { %v1289_v62 = vadd.f32 %v1257_v10, %v1220_v59  ;;  %v962_v17 = vmul.f32 %v2570_v7, %v3702_v35  ;;  %v963_v18 = vmul.f32 %v2570_v7, %v3703_v9  ;;  %v1031_v43 = vmul.f32 %v2618_v37, %v3038_v40 }
 0x14e   : > { %v1032_v21 = vmul.f32 %v2618_v37, %v3040_v38  ;;  %v2147_v41 = vpack.c.bf16 %v1649_v5, %v1648_v58  ;;  %v1393_v49 = vadd.f32 %v3704_v42, %v1288_v14  ;;  %v1136_v33 = vmul.f32 %v2557_v60, %v2853_v45  ;;  %v3076_v45 = vld [vmem:[#allocation2 + $0x1a9] sm:$0xff] }
 0x14f   : > { %v1394_v29 = vadd.f32 %v3705_v32, %v1289_v62  ;;  %v994_v3 = vadd.f32 %v962_v17, %v893_v48  ;;  %v995_v10 = vadd.f32 %v963_v18, %v894_v56  ;;  %v1137_v54 = vmul.f32 %v2557_v60, %v2845_v36  ;;  %v3082_v56 = vld [vmem:[#allocation2 + $0x1b1] sm:$0xff] }
 0x150   : > { %v1205_v4 = vmul.f32 %v2563_v1, %v2877_v12  ;;  %2149 = vmatprep.subr.msk.bf16.mxu1 %vm2968_vm3, %v2147_v41  ;;  %v1462_v51 = vadd.f32 %v1430_v50, %v1393_v49  ;;  %v1206_v58 = vmul.f32 %v2563_v1, %v2870_v52  ;;  %v1274_v5 = vmul.f32 %v2642_v57, %v3058_v0 }
 0x151   : > { %v1463_v59 = vadd.f32 %v1431_v16, %v1394_v29  ;;  %2152 = vmatpush3.bf16.xpose.msk.msra.mxu1 %vm2968_vm3, %v2150_v22  ;;  %v1063_v36 = vadd.f32 %v1031_v43, %v994_v3  ;;  %v1064_v48 = vadd.f32 %v1032_v21, %v995_v10  ;;  %v1275_v12 = vmul.f32 %v2642_v57, %v3062_v27  ;;  %v3706_v21 = vld [vmem:[#allocation13_spill] sm:$0xff] }
 0x152   : > { %v1379_v50 = vmul.f32 %v2575_v8, %v2926_v47  ;;  %2155 = vmatprep.subr.msk.bf16.mxu1 %vm2968_vm3, %v2153_v55  ;;  %v1531_v52 = vadd.f32 %v1499_v46, %v1462_v51  ;;  %v1380_v14 = vmul.f32 %v2575_v8, %v2928_v11  ;;  %v1448_v22 = vmul.f32 %v2662_v13, %v2958_v6  ;;  %v3096_v47 = vld [vmem:[#allocation2 + $0xa7] sm:$0xff] }
 0x153   : > { %v1532_v16 = vadd.f32 %v1500_v26, %v1463_v59  ;;  %v1168_v62 = vadd.f32 %v1136_v33, %v1063_v36  ;;  %v1169_v17 = vadd.f32 %v1137_v54, %v1064_v48  ;;  %v1449_v18 = vmul.f32 %v2662_v13, %v2960_v2  ;;  %v3102_v26 = vld [vmem:[#allocation2 + $0xaf] sm:$0xff] }
 0x154   : > { %v1517_v43 = vmul.f32 %v2680_v39, %v3076_v45  ;;  %v1570_v55 = vadd.f32 %v2724_v31, %v1531_v52  ;;  %v1518_v11 = vmul.f32 %v2680_v39, %v3082_v56  ;;  %v877_v41 = vmul.f32 %v3701_v53, %v3706_v21 }
 0x155   : > { %v1571_v46 = vadd.f32 %v2724_v31, %v1532_v16  ;;  %v1237_v42 = vadd.f32 %v1205_v4, %v1168_v62  ;;  %v1238_v49 = vadd.f32 %v1206_v58, %v1169_v17  ;;  %v878_v32 = vmul.f32 %v3701_v53, %v2699_v61  ;;  %v3116_v53 = vld [vmem:[#allocation2 + $0xa8] sm:$0xff]  ;;  %v3120_v17 = vld [vmem:[#allocation2 + $0xb0] sm:$0xff] }
 0x156   : > { %v946_v29 = vmul.f32 %v2570_v7, %v2980_v34  ;;  %v1602_v33 = vmax.f32 %v1570_v55, 0.0  ;;  %v947_v10 = vmul.f32 %v2570_v7, %v2982_v15  ;;  %v1015_v54 = vmul.f32 %v2618_v37, %v3096_v47 }
 0x157   : > { %v1603_v3 = vmax.f32 %v1571_v46, 0.0  ;;  %v1306_v51 = vadd.f32 %v1274_v5, %v1237_v42  ;;  %v1307_v59 = vadd.f32 %v1275_v12, %v1238_v49  ;;  %v1016_v4 = vmul.f32 %v2618_v37, %v3102_v26 }
 0x158   : > { %v978_v36 = vadd.f32 %v946_v29, %v877_v41  ;;  %v1634_v58 = vmin.f32 %v1602_v33, 6.0  ;;  %v979_v61 = vadd.f32 %v947_v10, %v878_v32  ;;  %v1120_v52 = vmul.f32 %v2557_v60, %v3695_v24 }
 0x159   : > { %v1635_v48 = vmin.f32 %v1603_v3, 6.0  ;;  %v1411_v16 = vadd.f32 %v1379_v50, %v1306_v51  ;;  %v1412_v62 = vadd.f32 %v1380_v14, %v1307_v59  ;;  %v1121_v5 = vmul.f32 %v2557_v60, %v3696_v19  ;;  %v3130_v50 = vld [vmem:[#allocation2 + $0xa9] sm:$0xff]  ;;  %v3132_v14 = vld [vmem:[#allocation2 + $0xb1] sm:$0xff]  ;;  %v3159_v59 = vld [vmem:[%s3642_s3] ss:$0 sm:$0xff] }
 0x15a   : > { %v1047_v7 = vadd.f32 %v1015_v54, %v978_v36  ;;  %v1048_v55 = vadd.f32 %v1016_v4, %v979_v61  ;;  %v1189_v46 = vmul.f32 %v2563_v1, %v3012_v44  ;;  %v1190_v21 = vmul.f32 %v2563_v1, %v3018_v25 }
 0x15b   : > { %v2156_v12 = vpack.c.bf16 %v1635_v48, %v1634_v58  ;;  %v1480_v41 = vadd.f32 %v1448_v22, %v1411_v16  ;;  %v1481_v42 = vadd.f32 %v1449_v18, %v1412_v62  ;;  %v1258_v24 = vmul.f32 %v2642_v57, %v3116_v53  ;;  %v3168_v48 = vld [vmem:[%s3642_s3 + $0x3] ss:$0 sm:$0xff] }
 0x15c   : > { %v1152_v49 = vadd.f32 %v1120_v52, %v1047_v7  ;;  %v1153_v60 = vadd.f32 %v1121_v5, %v1048_v55  ;;  %v1259_v19 = vmul.f32 %v2642_v57, %v3120_v17  ;;  %v1363_v1 = vmul.f32 %v2575_v8, %v3699_v63  ;;  %v3150_v63 = vld [vmem:[#allocation2 + $0x1c7] sm:$0xff] }
 0x15d   : > { %2158 = vmatpush3.bf16.xpose.msk.msra.mxu1 %vm2968_vm3, %v2156_v12  ;;  %v1364_v22 = vmul.f32 %v2575_v8, %v3700_v30  ;;  %v1549_v18 = vadd.f32 %v1517_v43, %v1480_v41  ;;  %v1550_v32 = vadd.f32 %v1518_v11, %v1481_v42  ;;  %v1432_v33 = vmul.f32 %v2662_v13, %v3028_v23  ;;  %v3154_v11 = vld [vmem:[#allocation2 + $0x1cf] sm:$0xff] }
 0x15e   : > { %v1221_v29 = vadd.f32 %v1189_v46, %v1152_v49  ;;  %v1222_v3 = vadd.f32 %v1190_v21, %v1153_v60  ;;  %v1433_v10 = vmul.f32 %v2662_v13, %v3030_v28  ;;  %v1501_v54 = vmul.f32 %v2680_v39, %v3130_v50  ;;  %v3178_v46 = vld [vmem:[#allocation2 + $0x1c8] sm:$0xff]  ;;  %v3180_v21 = vld [vmem:[#allocation2 + $0x1d0] sm:$0xff] }
 0x15f   : > { %v1502_v51 = vmul.f32 %v2680_v39, %v3132_v14  ;;  %v1588_v8 = vadd.f32 %v2724_v31, %v1549_v18  ;;  %v1589_v30 = vadd.f32 %v2724_v31, %v1550_v32  ;;  %v895_v36 = vmul.f32 %v3159_v59, %v3702_v35 }
 0x160   : > { %v1290_v43 = vadd.f32 %v1258_v24, %v1221_v29  ;;  %v1291_v4 = vadd.f32 %v1259_v19, %v1222_v3  ;;  %v896_v58 = vmul.f32 %v3159_v59, %v3703_v9  ;;  %v964_v61 = vmul.f32 %v3168_v48, %v3038_v40  ;;  %v3185_v24 = vld [vmem:[%s3642_s3 + $0x4] ss:$0 sm:$0xff]  ;;  %v3195_v3 = vld [vmem:[#allocation2 + $0x1c9] sm:$0xff] }
 0x161   : > { %v965_v52 = vmul.f32 %v3168_v48, %v3040_v38  ;;  %v1620_v16 = vmax.f32 %v1588_v8, 0.0  ;;  %v1621_v62 = vmax.f32 %v1589_v30, 0.0  ;;  %v1033_v35 = vmul.f32 %v2618_v37, %v3150_v63  ;;  %v3707_v30 = vld [vmem:[#allocation25_spill] sm:$0xff] }
 0x162   : > { %v1395_v7 = vadd.f32 %v1363_v1, %v1290_v43  ;;  %v1396_v5 = vadd.f32 %v1364_v22, %v1291_v4  ;;  %v996_v12 = vadd.f32 %v964_v61, %v895_v36  ;;  %v1034_v55 = vmul.f32 %v2618_v37, %v3154_v11  ;;  %v3708_v36 = vld [vmem:[#allocation24_spill] sm:$0xff] }
 0x163   : > { %v997_v9 = vadd.f32 %v965_v52, %v896_v58  ;;  %v1652_v41 = vmin.f32 %v1620_v16, 6.0  ;;  %v1653_v42 = vmin.f32 %v1621_v62, 6.0  ;;  %v1207_v60 = vmul.f32 %v3185_v24, %v3058_v0  ;;  %v3199_v4 = vld [vmem:[#allocation2 + $0x1d1] sm:$0xff]  ;;  %v3204_v58 = vld [vmem:[%s3642_s3 + $0x2] ss:$0 sm:$0xff] }
 0x164   : > { %v1464_v49 = vadd.f32 %v1432_v33, %v1395_v7  ;;  %v1465_v19 = vadd.f32 %v1433_v10, %v1396_v5  ;;  %v1065_v1 = vadd.f32 %v1033_v35, %v996_v12  ;;  %v1208_v37 = vmul.f32 %v3185_v24, %v3062_v27  ;;  %v3220_v35 = vld [vmem:[#allocation2 + $0xc7] sm:$0xff]  ;;  %v3222_v5 = vld [vmem:[#allocation2 + $0xcf] sm:$0xff] }
 0x165   : > { %v1066_v22 = vadd.f32 %v1034_v55, %v997_v9  ;;  %v2159_v18 = vpack.c.bf16 %v1653_v42, %v1652_v41  ;;  %v1276_v29 = vmul.f32 %v2642_v57, %v3178_v46  ;;  %v1277_v33 = vmul.f32 %v2642_v57, %v3180_v21 }
 0x166   : > { %v1533_v32 = vadd.f32 %v1501_v54, %v1464_v49  ;;  %v1534_v8 = vadd.f32 %v1502_v51, %v1465_v19  ;;  %v1170_v43 = vadd.f32 %v3707_v30, %v1065_v1  ;;  %v1381_v54 = vmul.f32 %v3204_v58, %v2958_v6 }
 0x167   : > { %v1171_v10 = vadd.f32 %v3708_v36, %v1066_v22  ;;  %2161 = vmatprep.subr.msk.bf16.mxu1 %vm2968_vm3, %v2159_v18  ;;  %v1382_v51 = vmul.f32 %v3204_v58, %v2960_v2  ;;  %v1450_v61 = vmul.f32 %v2662_v13, %v3076_v45  ;;  %v1451_v52 = vmul.f32 %v2662_v13, %v3082_v56 }
 0x168   : > { %v1572_v57 = vadd.f32 %v2724_v31, %v1533_v32  ;;  %v1573_v16 = vadd.f32 %v2724_v31, %v1534_v8  ;;  %v1239_v62 = vadd.f32 %v1207_v60, %v1170_v43  ;;  %v1519_v6 = vmul.f32 %v2680_v39, %v3195_v3  ;;  %v3243_v32 = vld [vmem:[#allocation2 + $0xc8] sm:$0xff]  ;;  %v3250_v8 = vld [vmem:[%s3642_s3 + $0x1] ss:$0 sm:$0xff] }
 0x169   : > { %v1240_v7 = vadd.f32 %v1208_v37, %v1171_v10  ;;  %v1520_v2 = vmul.f32 %v2680_v39, %v3199_v4  ;;  %v879_v9 = vmul.f32 %v3159_v59, %v2980_v34  ;;  %v880_v13 = vmul.f32 %v3159_v59, %v2982_v15  ;;  %v3237_v39 = vld [vmem:[%s3642_s3 + $0x6] ss:$0 sm:$0xff] }
 0x16a   : > { %v1604_v12 = vmax.f32 %v1572_v57, 0.0  ;;  %v1605_v55 = vmax.f32 %v1573_v16, 0.0  ;;  %v1308_v41 = vadd.f32 %v1276_v29, %v1239_v62  ;;  %v948_v49 = vmul.f32 %v3168_v48, %v3096_v47  ;;  %v3245_v29 = vld [vmem:[#allocation2 + $0xd0] sm:$0xff] }
 0x16b   : > { %v1309_v42 = vadd.f32 %v1277_v33, %v1240_v7  ;;  %v949_v19 = vmul.f32 %v3168_v48, %v3102_v26  ;;  %v1017_v34 = vmul.f32 %v3237_v39, %v3220_v35  ;;  %v1018_v15 = vmul.f32 %v3237_v39, %v3222_v5  ;;  %v3263_v7 = vld [vmem:[%s3642_s3 + $0x7] ss:$0 sm:$0xff] }
 0x16c   : > { %v1636_v60 = vmin.f32 %v1604_v12, 6.0  ;;  %v1637_v1 = vmin.f32 %v1605_v55, 6.0  ;;  %v1413_v22 = vadd.f32 %v1381_v54, %v1308_v41  ;;  %v980_v18 = vadd.f32 %v948_v49, %v879_v9  ;;  %v3269_v12 = vld [vmem:[#allocation2 + $0xc9] sm:$0xff]  ;;  %v3282_v49 = vld [vmem:[%s3642_s3 + $0x5] ss:$0 sm:$0xff] }
 0x16d   : > { %v1414_v37 = vadd.f32 %v1382_v51, %v1309_v42  ;;  %v981_v33 = vadd.f32 %v949_v19, %v880_v13  ;;  %v1122_v30 = vmul.f32 %v3250_v8, %v3012_v44  ;;  %v1123_v43 = vmul.f32 %v3250_v8, %v3018_v25  ;;  %v3273_v13 = vld [vmem:[#allocation2 + $0xd1] sm:$0xff] }
 0x16e   : > { %v1191_v36 = vmul.f32 %v3185_v24, %v3116_v53  ;;  %v2162_v10 = vpack.c.bf16 %v1637_v1, %v1636_v60  ;;  %v1482_v54 = vadd.f32 %v1450_v61, %v1413_v22  ;;  %v1049_v51 = vadd.f32 %v1017_v34, %v980_v18  ;;  %v3299_v1 = vld [vmem:[#allocation2 + $0x1ef] sm:$0xff] }
 0x16f   : > { %v1483_v57 = vadd.f32 %v1451_v52, %v1414_v37  ;;  %v1050_v16 = vadd.f32 %v1018_v15, %v981_v33  ;;  %v1192_v62 = vmul.f32 %v3185_v24, %v3120_v17  ;;  %v1260_v44 = vmul.f32 %v3263_v7, %v3243_v32  ;;  %v3297_v15 = vld [vmem:[#allocation2 + $0x1e7] sm:$0xff] }
 0x170   : > { %v1261_v25 = vmul.f32 %v3263_v7, %v3245_v29  ;;  %2164 = vmatpush3.bf16.xpose.msk.msra.mxu1 %vm2968_vm3, %v2162_v10  ;;  %v1551_v61 = vadd.f32 %v1519_v6, %v1482_v54  ;;  %v1154_v9 = vadd.f32 %v1122_v30, %v1049_v51  ;;  %v1365_v55 = vmul.f32 %v3204_v58, %v3028_v23 }
 0x171   : > { %v1552_v52 = vadd.f32 %v1520_v2, %v1483_v57  ;;  %v1155_v41 = vadd.f32 %v1123_v43, %v1050_v16  ;;  %v1366_v42 = vmul.f32 %v3204_v58, %v3030_v28  ;;  %v1434_v60 = vmul.f32 %v3282_v49, %v3130_v50  ;;  %v3293_v28 = vld [vmem:[%s3642_s3 + $0x8] ss:$0 sm:$0xff] }
 0x172   : > { %v1435_v6 = vmul.f32 %v3282_v49, %v3132_v14  ;;  %v1590_v2 = vadd.f32 %v2724_v31, %v1551_v61  ;;  %v1223_v23 = vadd.f32 %v1191_v36, %v1154_v9  ;;  %v1503_v34 = vmul.f32 %v3293_v28, %v3269_v12  ;;  %v3315_v61 = vld [vmem:[#allocation2 + $0x1e8] sm:$0xff]  ;;  %v3317_v9 = vld [vmem:[#allocation2 + $0x1f0] sm:$0xff] }
 0x173   : > { %v1591_v19 = vadd.f32 %v2724_v31, %v1552_v52  ;;  %v1224_v22 = vadd.f32 %v1192_v62, %v1155_v41  ;;  %v1504_v37 = vmul.f32 %v3293_v28, %v3273_v13  ;;  %v897_v31 = vmul.f32 %v3159_v59, %v3038_v40 }
 0x174   : > { %v898_v18 = vmul.f32 %v3159_v59, %v3040_v38  ;;  %v1622_v33 = vmax.f32 %v1590_v2, 0.0  ;;  %v1292_v43 = vadd.f32 %v1260_v44, %v1223_v23  ;;  %v966_v36 = vmul.f32 %v3168_v48, %v3150_v63 }
 0x175   : > { %v1623_v30 = vmax.f32 %v1591_v19, 0.0  ;;  %v1293_v10 = vadd.f32 %v1261_v25, %v1224_v22  ;;  %v967_v54 = vmul.f32 %v3168_v48, %v3154_v11  ;;  %v1035_v57 = vmul.f32 %v3237_v39, %v3297_v15 }
 0x176   : > { %v1036_v51 = vmul.f32 %v3237_v39, %v3299_v1  ;;  %v1654_v40 = vmin.f32 %v1622_v33, 6.0  ;;  %v1397_v62 = vadd.f32 %v1365_v55, %v1292_v43  ;;  %v998_v38 = vadd.f32 %v966_v36, %v897_v31  ;;  %v3329_v33 = vld [vmem:[#allocation2 + $0x1e9] sm:$0xff] }
 0x177   : > { %v1655_v16 = vmin.f32 %v1623_v30, 6.0  ;;  %v1398_v44 = vadd.f32 %v1366_v42, %v1293_v10  ;;  %v999_v52 = vadd.f32 %v967_v54, %v898_v18  ;;  %v1140_v25 = vmul.f32 %v3250_v8, %v3058_v0  ;;  %v3335_v30 = vld [vmem:[#allocation2 + $0x1f1] sm:$0xff] }
 0x178   : > { %v1141_v41 = vmul.f32 %v3250_v8, %v3062_v27  ;;  %v1466_v19 = vadd.f32 %v1434_v60, %v1397_v62  ;;  %v1067_v23 = vadd.f32 %v1035_v57, %v998_v38  ;;  %v1209_v22 = vmul.f32 %v3185_v24, %v3178_v46  ;;  %v3358_v38 = vld [vmem:[#allocation2 + $0xef] sm:$0xff] }
 0x179   : > { %v2165_v2 = vpack.c.bf16 %v1655_v16, %v1654_v40  ;;  %v1467_v55 = vadd.f32 %v1435_v6, %v1398_v44  ;;  %v1068_v31 = vadd.f32 %v1036_v51, %v999_v52  ;;  %v1210_v42 = vmul.f32 %v3185_v24, %v3180_v21 }
 0x17a   : > { %v1278_v18 = vmul.f32 %v3263_v7, %v3315_v61  ;;  %v1535_v0 = vadd.f32 %v1503_v34, %v1466_v19  ;;  %v1172_v27 = vadd.f32 %v1140_v25, %v1067_v23  ;;  %v1279_v60 = vmul.f32 %v3263_v7, %v3317_v9  ;;  %v3346_v34 = vld [vmem:[%s3643_s4] ss:$0 sm:$0xff] }
 0x17b   : > { %2167 = vmatprep.subr.msk.bf16.mxu1 %vm2968_vm3, %v2165_v2  ;;  %v1383_v6 = vmul.f32 %v3204_v58, %v3076_v45  ;;  %v1536_v43 = vadd.f32 %v1504_v37, %v1467_v55  ;;  %v1173_v36 = vadd.f32 %v1141_v41, %v1068_v31  ;;  %v1384_v10 = vmul.f32 %v3204_v58, %v3082_v56  ;;  %v3353_v37 = vld [vmem:[#allocation2 + $0xe7] sm:$0xff] }
 0x17c   : > { %v1452_v54 = vmul.f32 %v3282_v49, %v3195_v3  ;;  %v1574_v57 = vadd.f32 %v3346_v34, %v1535_v0  ;;  %v1241_v51 = vadd.f32 %v1209_v22, %v1172_v27  ;;  %v1453_v40 = vmul.f32 %v3282_v49, %v3199_v4 }
 0x17d   : > { %v1521_v45 = vmul.f32 %v3293_v28, %v3329_v33  ;;  %v1575_v56 = vadd.f32 %v3346_v34, %v1536_v43  ;;  %v1242_v16 = vadd.f32 %v1210_v42, %v1173_v36  ;;  %v1522_v62 = vmul.f32 %v3293_v28, %v3335_v30  ;;  %v3372_v43 = vld [vmem:[#allocation2 + $0xe8] sm:$0xff]  ;;  %v3374_v36 = vld [vmem:[#allocation2 + $0xf0] sm:$0xff] }
 0x17e   : > { %v881_v44 = vmul.f32 %v3159_v59, %v3096_v47  ;;  %v1606_v52 = vmax.f32 %v1574_v57, 0.0  ;;  %v1310_v25 = vadd.f32 %v1278_v18, %v1241_v51  ;;  %v882_v41 = vmul.f32 %v3159_v59, %v3102_v26 }
 0x17f   : > { %v950_v2 = vmul.f32 %v3168_v48, %v3220_v35  ;;  %v1607_v19 = vmax.f32 %v1575_v56, 0.0  ;;  %v1311_v23 = vadd.f32 %v1279_v60, %v1242_v16  ;;  %v951_v22 = vmul.f32 %v3168_v48, %v3222_v5 }
 0x180   : > { %v1019_v55 = vmul.f32 %v3237_v39, %v3353_v37  ;;  %v1638_v31 = vmin.f32 %v1606_v52, 6.0  ;;  %v1415_v42 = vadd.f32 %v1383_v6, %v1310_v25  ;;  %v1020_v47 = vmul.f32 %v3237_v39, %v3358_v38 }
 0x181   : > { %v982_v0 = vadd.f32 %v950_v2, %v881_v44  ;;  %v1639_v18 = vmin.f32 %v1607_v19, 6.0  ;;  %v1416_v27 = vadd.f32 %v1384_v10, %v1311_v23  ;;  %v983_v26 = vadd.f32 %v951_v22, %v882_v41 }
 0x182   : > { %v1124_v60 = vmul.f32 %v3250_v8, %v3116_v53  ;;  %v1484_v57 = vadd.f32 %v1452_v54, %v1415_v42  ;;  %v1125_v56 = vmul.f32 %v3250_v8, %v3120_v17  ;;  %v1193_v6 = vmul.f32 %v3185_v24, %v3243_v32  ;;  %v3388_v54 = vld [vmem:[#allocation2 + $0xe9] sm:$0xff]  ;;  %v3390_v17 = vld [vmem:[#allocation2 + $0xf1] sm:$0xff] }
 0x183   : > { %v1051_v51 = vadd.f32 %v1019_v55, %v982_v0  ;;  %v2168_v16 = vpack.c.bf16 %v1639_v18, %v1638_v31  ;;  %v1485_v44 = vadd.f32 %v1453_v40, %v1416_v27  ;;  %v1052_v52 = vadd.f32 %v1020_v47, %v983_v26  ;;  %v3408_v18 = vld [vmem:[#allocation2 + $0x207] sm:$0xff] }
 0x184   : > { %v1194_v10 = vmul.f32 %v3185_v24, %v3245_v29  ;;  %v1553_v25 = vadd.f32 %v1521_v45, %v1484_v57  ;;  %v1262_v2 = vmul.f32 %v3263_v7, %v3372_v43  ;;  %v1263_v53 = vmul.f32 %v3263_v7, %v3374_v36 }
 0x185   : > { %v1156_v41 = vadd.f32 %v1124_v60, %v1051_v51  ;;  %2170 = vmatpush3.bf16.xpose.msk.msra.mxu1 %vm2968_vm3, %v2168_v16  ;;  %v1554_v40 = vadd.f32 %v1522_v62, %v1485_v44  ;;  %v1157_v19 = vadd.f32 %v1125_v56, %v1052_v52  ;;  %v1367_v23 = vmul.f32 %v3204_v58, %v3130_v50 }
 0x186   : > { %v1368_v45 = vmul.f32 %v3204_v58, %v3132_v14  ;;  %v1592_v22 = vadd.f32 %v3346_v34, %v1553_v25  ;;  %v1436_v31 = vmul.f32 %v3282_v49, %v3269_v12  ;;  %v1437_v42 = vmul.f32 %v3282_v49, %v3273_v13  ;;  %v3410_v14 = vld [vmem:[#allocation2 + $0x20f] sm:$0xff] }
 0x187   : > { %v1225_v55 = vadd.f32 %v1193_v6, %v1156_v41  ;;  %v1593_v0 = vadd.f32 %v3346_v34, %v1554_v40  ;;  %v1226_v47 = vadd.f32 %v1194_v10, %v1157_v19  ;;  %v1505_v62 = vmul.f32 %v3293_v28, %v3388_v54  ;;  %v3424_v40 = vld [vmem:[#allocation2 + $0x208] sm:$0xff] }
 0x188   : > { %v1506_v50 = vmul.f32 %v3293_v28, %v3390_v17  ;;  %v1624_v27 = vmax.f32 %v1592_v22, 0.0  ;;  %v899_v60 = vmul.f32 %v3159_v59, %v3150_v63  ;;  %v900_v57 = vmul.f32 %v3159_v59, %v3154_v11 }
 0x189   : > { %v1294_v26 = vadd.f32 %v1262_v2, %v1225_v55  ;;  %v1625_v51 = vmax.f32 %v1593_v0, 0.0  ;;  %v1295_v56 = vadd.f32 %v1263_v53, %v1226_v47  ;;  %v968_v6 = vmul.f32 %v3168_v48, %v3297_v15  ;;  %v3426_v53 = vld [vmem:[#allocation2 + $0x210] sm:$0xff] }
 0x18a   : > { %v969_v16 = vmul.f32 %v3168_v48, %v3299_v1  ;;  %v1656_v44 = vmin.f32 %v1624_v27, 6.0  ;;  %v1037_v10 = vmul.f32 %v3237_v39, %v3408_v18  ;;  %v1038_v25 = vmul.f32 %v3237_v39, %v3410_v14 }
 0x18b   : > { %v1399_v52 = vadd.f32 %v1367_v23, %v1294_v26  ;;  %v1657_v63 = vmin.f32 %v1625_v51, 6.0  ;;  %v1400_v41 = vadd.f32 %v1368_v45, %v1295_v56  ;;  %v1000_v2 = vadd.f32 %v968_v6, %v899_v60  ;;  %v3444_v56 = vld [vmem:[#allocation2 + $0x211] sm:$0xff] }
 0x18c   : > { %v1001_v11 = vadd.f32 %v969_v16, %v900_v57  ;;  %v1142_v22 = vmul.f32 %v3250_v8, %v3178_v46  ;;  %v1143_v23 = vmul.f32 %v3250_v8, %v3180_v21  ;;  %v1211_v55 = vmul.f32 %v3185_v24, %v3315_v61  ;;  %v3440_v57 = vld [vmem:[#allocation2 + $0x209] sm:$0xff] }
 0x18d   : > { %v1468_v19 = vadd.f32 %v1436_v31, %v1399_v52  ;;  %v2171_v0 = vpack.c.bf16 %v1657_v63, %v1656_v44  ;;  %v1469_v47 = vadd.f32 %v1437_v42, %v1400_v41  ;;  %v1069_v27 = vadd.f32 %v1037_v10, %v1000_v2 }
 0x18e   : > { %v1070_v45 = vadd.f32 %v1038_v25, %v1001_v11  ;;  %v1212_v60 = vmul.f32 %v3185_v24, %v3317_v9  ;;  %v1280_v31 = vmul.f32 %v3263_v7, %v3424_v40  ;;  %v1281_v46 = vmul.f32 %v3263_v7, %v3426_v53 }
 0x18f   : > { %v1537_v26 = vadd.f32 %v1505_v62, %v1468_v19  ;;  %2173 = vmatprep.subr.msk.bf16.mxu1 %vm2968_vm3, %v2171_v0  ;;  %v1538_v21 = vadd.f32 %v1506_v50, %v1469_v47  ;;  %v1174_v51 = vadd.f32 %v1142_v22, %v1069_v27  ;;  %v1385_v62 = vmul.f32 %v3204_v58, %v3195_v3  ;;  %v2241_v47 = vld [vmem:[#allocation2 + $0x107] sm:$0xff] }
 0x190   : > { %v1175_v42 = vadd.f32 %v1143_v23, %v1070_v45  ;;  %v1386_v16 = vmul.f32 %v3204_v58, %v3199_v4  ;;  %v1454_v44 = vmul.f32 %v3282_v49, %v3329_v33  ;;  %v1455_v52 = vmul.f32 %v3282_v49, %v3335_v30  ;;  %v2242_v45 = vld [vmem:[#allocation2 + $0x10f] sm:$0xff] }
 0x191   : > { %v1576_v6 = vadd.f32 %v3346_v34, %v1537_v26  ;;  %v1577_v50 = vadd.f32 %v3346_v34, %v1538_v21  ;;  %v1243_v10 = vadd.f32 %v1211_v55, %v1174_v51  ;;  %v1523_v63 = vmul.f32 %v3293_v28, %v3440_v57 }
 0x192   : > { %v1244_v25 = vadd.f32 %v1212_v60, %v1175_v42  ;;  %v1524_v3 = vmul.f32 %v3293_v28, %v3444_v56  ;;  %v883_v4 = vmul.f32 %v3159_v59, %v3220_v35  ;;  %v884_v2 = vmul.f32 %v3159_v59, %v3222_v5 }
 0x193   : > { %v1608_v41 = vmax.f32 %v1576_v6, 0.0  ;;  %v1609_v11 = vmax.f32 %v1577_v50, 0.0  ;;  %v1312_v19 = vadd.f32 %v1280_v31, %v1243_v10  ;;  %v952_v23 = vmul.f32 %v3168_v48, %v3353_v37 }
 0x194   : > { %v1313_v22 = vadd.f32 %v1281_v46, %v1244_v25  ;;  %v953_v0 = vmul.f32 %v3168_v48, %v3358_v38  ;;  %v1021_v27 = vmul.f32 %v2241_v47, %v3237_v39  ;;  %v1022_v26 = vmul.f32 %v2242_v45, %v3237_v39 }
 0x195   : > { %v1640_v55 = vmin.f32 %v1608_v41, 6.0  ;;  %v1641_v35 = vmin.f32 %v1609_v11, 6.0  ;;  %v1417_v60 = vadd.f32 %v1385_v62, %v1312_v19  ;;  %v984_v5 = vadd.f32 %v952_v23, %v883_v4  ;;  %v3481_v4 = vld [vmem:[#allocation2 + $0x108] sm:$0xff] }
 0x196   : > { %v1418_v21 = vadd.f32 %v1386_v16, %v1313_v22  ;;  %v3471_v31 = vmul.f32 %v2242_v45, %v3168_v48  ;;  %v985_v46 = vadd.f32 %v953_v0, %v884_v2  ;;  %v1126_v51 = vmul.f32 %v3250_v8, %v3243_v32  ;;  %v865_v45 = vld [vmem:[#allocation2 + $0x22f] sm:$0xff] }
 0x197   : > { %v1127_v42 = vmul.f32 %v3250_v8, %v3245_v29  ;;  %v2174_v6 = vpack.c.bf16 %v1641_v35, %v1640_v55  ;;  %v1486_v50 = vadd.f32 %v1454_v44, %v1417_v60  ;;  %v1053_v25 = vadd.f32 %v1021_v27, %v984_v5  ;;  %v864_v27 = vld [vmem:[#allocation2 + $0x227] sm:$0xff] }
 0x198   : > { %v1487_v10 = vadd.f32 %v1455_v52, %v1418_v21  ;;  %v1054_v41 = vadd.f32 %v1022_v26, %v985_v46  ;;  %v1195_v62 = vmul.f32 %v3185_v24, %v3372_v43  ;;  %v1196_v16 = vmul.f32 %v3185_v24, %v3374_v36  ;;  %v3487_v52 = vld [vmem:[#allocation2 + $0x110] sm:$0xff] }
 0x199   : > { %v1264_v2 = vmul.f32 %v3481_v4, %v3263_v7  ;;  %2176 = vmatpush3.bf16.xpose.msk.msra.mxu1 %vm2968_vm3, %v2174_v6  ;;  %v1555_v32 = vadd.f32 %v1523_v63, %v1486_v50  ;;  %v1158_v44 = vadd.f32 %v1126_v51, %v1053_v25  ;;  %v1265_v11 = vmul.f32 %v3487_v52, %v3263_v7  ;;  %v3501_v35 = vld [vmem:[#allocation2 + $0x109] sm:$0xff] }
 0x19a   : > { %v1556_v29 = vadd.f32 %v1524_v3, %v1487_v10  ;;  %v1159_v19 = vadd.f32 %v1127_v42, %v1054_v41  ;;  %v1369_v22 = vmul.f32 %v3204_v58, %v3269_v12  ;;  %v1370_v23 = vmul.f32 %v3204_v58, %v3273_v13 }
 0x19b   : > { %v1438_v55 = vmul.f32 %v3282_v49, %v3388_v54  ;;  %v1594_v0 = vadd.f32 %v3346_v34, %v1555_v32  ;;  %v1227_v3 = vadd.f32 %v1195_v62, %v1158_v44  ;;  %v1439_v47 = vmul.f32 %v3282_v49, %v3390_v17  ;;  %v1107_v32 = vld [vmem:[#allocation2 + $0x228] sm:$0xff] }
 0x19c   : > { %v1595_v63 = vadd.f32 %v3346_v34, %v1556_v29  ;;  %v1228_v26 = vadd.f32 %v1196_v16, %v1159_v19  ;;  %v1507_v12 = vmul.f32 %v3501_v35, %v3293_v28  ;;  %v901_v13 = vmul.f32 %v3159_v59, %v3297_v15  ;;  %v1108_v29 = vld [vmem:[#allocation2 + $0x230] sm:$0xff] }
 0x19d   : > { %v902_v60 = vmul.f32 %v3159_v59, %v3299_v1  ;;  %v1626_v21 = vmax.f32 %v1594_v0, 0.0  ;;  %v1296_v46 = vadd.f32 %v1264_v2, %v1227_v3  ;;  %v970_v51 = vmul.f32 %v3168_v48, %v3408_v18  ;;  %v3521_v0 = vld [vmem:[#allocation2 + $0x111] sm:$0xff] }
 0x19e   : > { %v1627_v5 = vmax.f32 %v1595_v63, 0.0  ;;  %v1297_v42 = vadd.f32 %v1265_v11, %v1228_v26  ;;  %v971_v6 = vmul.f32 %v3168_v48, %v3410_v14  ;;  %v1039_v50 = vmul.f32 %v3237_v39, %v864_v27 }
 0x19f   : > { %v1040_v10 = vmul.f32 %v3237_v39, %v865_v45  ;;  %v1658_v25 = vmin.f32 %v1626_v21, 6.0  ;;  %v1401_v15 = vadd.f32 %v1369_v22, %v1296_v46  ;;  %v1002_v62 = vadd.f32 %v970_v51, %v901_v13  ;;  %v1351_v46 = vld [vmem:[#allocation2 + $0x231] sm:$0xff] }
 0x1a0   : > { %v1659_v41 = vmin.f32 %v1627_v5, 6.0  ;;  %v1402_v16 = vadd.f32 %v1370_v23, %v1297_v42  ;;  %v1003_v1 = vadd.f32 %v971_v6, %v902_v60  ;;  %v1144_v2 = vmul.f32 %v3250_v8, %v3315_v61 }
 0x1a1   : > { %v1145_v18 = vmul.f32 %v3250_v8, %v3317_v9  ;;  %v1470_v48 = vadd.f32 %v1438_v55, %v1401_v15  ;;  %v1071_v14 = vadd.f32 %v1039_v50, %v1002_v62  ;;  %v1213_v11 = vmul.f32 %v3185_v24, %v3424_v40  ;;  %v1350_v40 = vld [vmem:[#allocation2 + $0x229] sm:$0xff] }
 0x1a2   : > { %v2177_v44 = vpack.c.bf16 %v1659_v41, %v1658_v25  ;;  %v1471_v19 = vadd.f32 %v1439_v47, %v1402_v16  ;;  %v1508_v22 = vmul.f32 %v3521_v0, %v3293_v28  ;;  %v1072_v23 = vadd.f32 %v1040_v10, %v1003_v1  ;;  %v2247_v50 = vld [vmem:[#allocation2 + $0x127] sm:$0xff]  ;;  %v2248_v15 = vld [vmem:[#allocation2 + $0x12f] sm:$0xff] }
 0x1a3   : > { %v1214_v63 = vmul.f32 %v3185_v24, %v3426_v53  ;;  %v1539_v61 = vadd.f32 %v1507_v12, %v1470_v48  ;;  %v1176_v9 = vadd.f32 %v1144_v2, %v1071_v14  ;;  %v1282_v55 = vmul.f32 %v3263_v7, %v1107_v32 }
 0x1a4   : > { %2179 = vmatprep.subr.msk.bf16.mxu1 %vm2968_vm3, %v2177_v44  ;;  %v1283_v3 = vmul.f32 %v3263_v7, %v1108_v29  ;;  %v1540_v47 = vadd.f32 %v1508_v22, %v1471_v19  ;;  %v1177_v27 = vadd.f32 %v1145_v18, %v1072_v23  ;;  %v1387_v45 = vmul.f32 %v3204_v58, %v3329_v33 }
 0x1a5   : > { %v1388_v26 = vmul.f32 %v3204_v58, %v3335_v30  ;;  %v1578_v53 = vadd.f32 %v3346_v34, %v1539_v61  ;;  %v1245_v13 = vadd.f32 %v1213_v11, %v1176_v9  ;;  %v1456_v12 = vmul.f32 %v3282_v49, %v3440_v57  ;;  %v2249_v61 = vld [vmem:[#allocation2 + $0x128] sm:$0xff] }
 0x1a6   : > { %v1457_v60 = vmul.f32 %v3282_v49, %v3444_v56  ;;  %v1579_v21 = vadd.f32 %v3346_v34, %v1540_v47  ;;  %v1246_v5 = vadd.f32 %v1214_v63, %v1177_v27  ;;  %v1525_v51 = vmul.f32 %v3293_v28, %v1350_v40  ;;  %v3709_v56 = vld [vmem:[#allocation21_spill] sm:$0xff] }
 0x1a7   : > { %v885_v33 = vmul.f32 %v3159_v59, %v3353_v37  ;;  %v1610_v42 = vmax.f32 %v1578_v53, 0.0  ;;  %v1314_v30 = vadd.f32 %v1282_v55, %v1245_v13  ;;  %v886_v6 = vmul.f32 %v3159_v59, %v3358_v38  ;;  %v2250_v55 = vld [vmem:[#allocation2 + $0x130] sm:$0xff] }
 0x1a8   : > { %v1023_v57 = vmul.f32 %v2247_v50, %v3237_v39  ;;  %v1611_v10 = vmax.f32 %v1579_v21, 0.0  ;;  %v1315_v25 = vadd.f32 %v1283_v3, %v1246_v5  ;;  %v1024_v62 = vmul.f32 %v2248_v15, %v3237_v39 }
 0x1a9   : > { %v986_v41 = vadd.f32 %v3709_v56, %v885_v33  ;;  %v1642_v16 = vmin.f32 %v1610_v42, 6.0  ;;  %v1419_v1 = vadd.f32 %v1387_v45, %v1314_v30  ;;  %v1526_v32 = vmul.f32 %v3293_v28, %v1351_v46  ;;  %v2251_v46 = vld [vmem:[#allocation2 + $0x129] sm:$0xff] }
 0x1aa   : > { %v987_v37 = vadd.f32 %v3471_v31, %v886_v6  ;;  %v1643_v29 = vmin.f32 %v1611_v10, 6.0  ;;  %v1420_v2 = vadd.f32 %v1388_v26, %v1315_v25  ;;  %v1128_v59 = vmul.f32 %v3250_v8, %v3372_v43 }
 0x1ab   : > { %v1055_v18 = vadd.f32 %v1023_v57, %v986_v41  ;;  %v1488_v38 = vadd.f32 %v1456_v12, %v1419_v1  ;;  %v1129_v48 = vmul.f32 %v3250_v8, %v3374_v36  ;;  %v1197_v19 = vmul.f32 %v3481_v4, %v3185_v24  ;;  %v1663_v4 = vld [vmem:[%s3645_s6] sm:$0xff] }
 0x1ac   : > { %v1056_v44 = vadd.f32 %v1024_v62, %v987_v37  ;;  %v2180_v14 = vpack.c.bf16 %v1643_v29, %v1642_v16  ;;  %v1489_v11 = vadd.f32 %v1457_v60, %v1420_v2  ;;  %v1198_v31 = vmul.f32 %v3487_v52, %v3185_v24  ;;  %v1839_v41 = vld [vmem:[%s323_s13] sm:$0xff]  ;;  %v1840_v62 = vld [vmem:[%s323_s13 + $0x8] sm:$0xff] }
 0x1ad   : > { %v1160_v39 = vadd.f32 %v1128_v59, %v1055_v18  ;;  %v1557_v22 = vadd.f32 %v1525_v51, %v1488_v38  ;;  %v1266_v9 = vmul.f32 %v2249_v61, %v3263_v7  ;;  %v1267_v3 = vmul.f32 %v2250_v55, %v3263_v7 }
 0x1ae   : > { %v1161_v23 = vadd.f32 %v1129_v48, %v1056_v44  ;;  %2182 = vmatpush3.bf16.xpose.msk.msra.mxu1 %vm2968_vm3, %v2180_v14  ;;  %v1558_v43 = vadd.f32 %v1526_v32, %v1489_v11  ;;  %v1371_v40 = vmul.f32 %v3204_v58, %v3388_v54  ;;  %v1372_v45 = vmul.f32 %v3204_v58, %v3390_v17  ;;  %v2252_v58 = vld [vmem:[#allocation2 + $0x131] sm:$0xff] }
 0x1af   : > { %v1229_v63 = vadd.f32 %v1197_v19, %v1160_v39  ;;  %v1596_v8 = vadd.f32 %v3346_v34, %v1557_v22  ;;  %v2319_v26 = vmov 0   ;;  %v1440_v7 = vmul.f32 %v3501_v35, %v3282_v49 }
 0x1b0   : > { %v1230_v36 = vadd.f32 %v1198_v31, %v1161_v23  ;;  %v1597_v24 = vadd.f32 %v3346_v34, %v1558_v43  ;;  %2230 = vset.pattern.permute.xlu0 %v2319_v26  ;;  %v1441_v21 = vmul.f32 %v3521_v0, %v3282_v49  ;;  %v1509_v51 = vmul.f32 %v2251_v46, %v3293_v28 }
 0x1b1   : > { %v1298_v52 = vadd.f32 %v1266_v9, %v1229_v63  ;;  %v1628_v47 = vmax.f32 %v1596_v8, 0.0  ;;  %1666 = vperm.xlu0 %2230, %v1663_v4   ;;  %v1510_v17 = vmul.f32 %v2252_v58, %v3293_v28  ;;  %v2253_v28 = vld [vmem:[%s3644_s5] sm:$0xff] }
 0x1b2   : > { %v1299_v27 = vadd.f32 %v1267_v3, %v1230_v36  ;;  %v1629_v53 = vmax.f32 %v1597_v24, 0.0 }
 0x1b3   : > { %v1403_v13 = vadd.f32 %v1371_v40, %v1298_v52  ;;  %v1660_v12 = vmin.f32 %v1628_v47, 6.0 }
 0x1b4   : > { %v1404_v60 = vadd.f32 %v1372_v45, %v1299_v27  ;;  %v1661_v5 = vmin.f32 %v1629_v53, 6.0 }
 0x1b5   : > { %v1472_v54 = vadd.f32 %v1440_v7, %v1403_v13 }
 0x1b6   : > { %v1473_v33 = vadd.f32 %v1441_v21, %v1404_v60  ;;  %v2183_v42 = vpack.c.bf16 %v1661_v5, %v1660_v12 }
 0x1b7   : > { %v1541_v30 = vadd.f32 %v1509_v51, %v1472_v54 }
 0x1b8   : > { %v1542_v35 = vadd.f32 %v1510_v17, %v1473_v33  ;;  %2185 = vmatprep.subr.msk.bf16.mxu1 %vm2968_vm3, %v2183_v42 }
 0x1b9   : > { %v1580_v6 = vadd.f32 %v3346_v34, %v1541_v30 }
 0x1ba   : > { %v1581_v49 = vadd.f32 %v3346_v34, %v1542_v35 }
 0x1bb   : > { %v1612_v0 = vmax.f32 %v1580_v6, 0.0 }
 0x1bc   : > { %v1613_v50 = vmax.f32 %v1581_v49, 0.0 }
 0x1bd   : > { %v1644_v57 = vmin.f32 %v1612_v0, 6.0 }
 0x1be   : > { %v1645_v10 = vmin.f32 %v1613_v50, 6.0 }
 0x1c0   : > { %v2186_v25 = vpack.c.bf16 %v1645_v10, %v1644_v57 }
 0x1c2   : > { %2188 = vmatpush3.bf16.xpose.msk.msra.mxu1 %vm2968_vm3, %v2186_v25 }
 0x1c9   : > { %2090 = vmatmul.mubr.msk.f32.vlgmr.msra.gmra.mrb[0].mxu1 %vm324_vm1, %v2253_v28 }
 0x230   : > { %v1667_v34 = vpop.permute.xlu0 %1666 }
 0x29c   : > { %v1834_v56 = vpop.f32.mrb[0].mxu1 }
 0x29d   : > { %v1835_v15 = vadd.f32 %v1834_v56, %v1667_v34  ;;  %v1836_v20 = vpop.f32.mrb[1].mxu1 }
 0x29e   : > { %v1837_v16 = vadd.f32 %v1836_v20, %v1667_v34 }
 0x29f   : > { %v1841_v1 = vadd.f32 %v1839_v41, %v1835_v15 }
 0x2a0   : > { %v1842_v32 = vadd.f32 %v1840_v62, %v1837_v16 }
 0x2a1   : > { %1843 = vst [vmem:[%s313_s18] sm:$0xff] %v1841_v1 }
 0x2a2   : > { %1844 = vst [vmem:[%s313_s18 + $0x8] sm:$0xff] %v1842_v32 }
 0x2a3   : > { %2267 = shalt.err (!%p2264_p3)
}
 0x2a4   : > { %s2268_s24 = scalar_lea.hbm %s3597_s22, 256  ;;  %s2272_s17 = scalar_lea.hbm %s3647_s8, 512 }
 0x2a5   : > { %p2269_p4 = scmp.ne.s32.totalorder %s3597_s22, %s2268_s24  ;;  %p2273_p9 = scmp.lt.u32.totalorder %s3597_s22, %s3647_s8 }
 0x2a6   : > { %p2274_p10 = scmp.lt.u32.totalorder %s2272_s17, %s2268_s24  ;;  %p2276_p12 = scmp.lt.u32.totalorder %s2268_s24, %s3597_s22 }
 0x2a7   : > { %p2270_p7 = pnand %p2269_p4, %p2404_p5 }
 0x2a8   : > { %p2275_p11 = por %p2274_p10, %p2273_p9 }
 0x2a9   : > { %p2271_p8 = pneg %p2270_p7 }
 0x2aa   : > { %p2277_p13 = por %p2276_p12, %p2275_p11 }
 0x2ac   : > { %p2278_p0 = pnand %p2277_p13, %p2271_p8 }
 0x2ae   : > { %2281 = shalt.err (!%p2278_p0)
}
 0x2af   : > { %2189 = dma.vmem_to_hbm [thread:$0]  (%p2404_p5), %s3599_s20, 256, %s3597_s22, %s1846_s23  }
 0x2b0 PF: > { %p2195_p1 = scmp.ge.s32.totalorder %s2316_s30, 2  ;;  %s1872_s19 = sand.u32 1, %s2304_s27  }
 0x2b1   : > { %s1873_s25 = scalar_lea.sflag [#allocation4], %s1872_s19 }
 0x2b2   : > { %p2192_p2 = pnand %p2195_p1, %p2408_p6 }
 0x2b4   : > { %2299 = dma.done.wait (!%p2192_p2), %s1873_s25, 256  }
 0x2b5   : > { %2301 = vsyncadd (!%p2192_p2), %s1873_s25, 4294967040  ;;  %p18_p3 = scmp.ge.s32.totalorder %s2391_s11, 4   ;;  %s3710_s27 = smov %s2308_s28 }
 0x2b6   : > { %s3711_s28 = smov %s2312_s29  ;;  %s3712_s29 = smov %s2402_s14 }
 0x2b7   : > { %s3713_s30 = smov %s2391_s11  ;;  %20 = sbr.rel (!%p18_p3) target bundleno = 3 (0x3), region = 92 }
 0x2be   :  { %1878 = vsyncpa [#allocation4], 1 }
 0x2bf   :  { %1880 = vsyncpa [#allocation4 + $0x1], 1 }

</bundles_post_ra>
